<compile_context>
chip_gen: v7x
topology: tpu7x:2x2x1
jax: 0.10.0
libtpu: 0.0.40
codegen_flags: <defaults>
</compile_context>

<pallas_src>
import jax
import jax.numpy as jnp
from jax.experimental import pallas as pl
from jax.experimental.pallas import tpu as pltpu  # noqa: F401  (not required at these shapes)

# ---------------- config ----------------
D_MODEL = 32
N_HEADS = 4
HEAD_DIM = D_MODEL // N_HEADS
FFN_DIM = 64
SEQ = 8
BATCH = 2
N_LAYERS = 2
PAD_IDX = 1           # embed_tokens.padding_idx
MAX_POS = 16          # max_position_embeddings
EPS = 1e-5
SCALING = HEAD_DIM ** -0.5
NEG_BIAS = -1e9       # additive key-padding bias (== -inf after softmax underflow)


def _layer_norm(x, g, b):
    mu = jnp.mean(x, axis=-1, keepdims=True)
    var = jnp.mean((x - mu) ** 2, axis=-1, keepdims=True)
    return (x - mu) * jax.lax.rsqrt(var + EPS) * g + b


def _gelu_new(x):
    # ACT2FN["gelu_new"]: 0.5*x*(1+tanh(sqrt(2/pi)*(x+0.044715*x^3)))
    return 0.5 * x * (1.0 + jnp.tanh(jnp.sqrt(2.0 / jnp.pi) * (x + 0.044715 * x * x * x)))


# ---------------- Pallas kernel (whole encoder, single invocation) ----------------
def bart_encoder_kernel(x_ref, pos_ref, bias_ref, emb_ln_ref,
                        wqkv_ref, bqkv_ref, wo_ref, bo_ref,
                        w1_ref, b1_ref, w2_ref, b2_ref, ln_ref,
                        o_ref):
    B, S, E = x_ref.shape

    # ---- embedding: inputs_embeds + position embeds, then layernorm_embedding ----
    x = x_ref[...] + pos_ref[...]                      # (B,S,E) + (S,E) broadcast
    emb_ln = emb_ln_ref[...]                           # (2, E): gamma, beta
    xf = _layer_norm(x.reshape(B * S, E), emb_ln[0], emb_ln[1])   # token-major (B*S, E)

    bias = bias_ref[...]                               # (B, 1, S) additive key-padding bias

    for l in range(N_LAYERS):                          # static, unrolled layer loop
        ln = ln_ref[l]                                 # (4, E): ln1_g, ln1_b, ln2_g, ln2_b

        # ---- self-attention (post-norm) ----
        residual = xf
        qkv = jnp.dot(xf, wqkv_ref[l], preferred_element_type=jnp.float32) + bqkv_ref[l][0]
        q = (qkv[:, :E] * SCALING).reshape(B, S, E)
        k = qkv[:, E:2 * E].reshape(B, S, E)
        v = qkv[:, 2 * E:].reshape(B, S, E)

        head_outs = []
        for h in range(N_HEADS):                       # static head loop, batched over B
            sl = slice(h * HEAD_DIM, (h + 1) * HEAD_DIM)
            s = jnp.einsum('bqd,bkd->bqk', q[:, :, sl], k[:, :, sl],
                           preferred_element_type=jnp.float32) + bias
            s = s - jnp.max(s, axis=-1, keepdims=True)
            p = jnp.exp(s)
            p = p * pl.reciprocal(jnp.sum(p, axis=-1, keepdims=True), approx=True)
            head_outs.append(jnp.einsum('bqk,bkd->bqd', p, v[:, :, sl],
                                        preferred_element_type=jnp.float32))
        attn = jnp.concatenate(head_outs, axis=-1).reshape(B * S, E)
        attn = jnp.dot(attn, wo_ref[l], preferred_element_type=jnp.float32) + bo_ref[l][0]

        xf = _layer_norm(residual + attn, ln[0], ln[1])           # dropout = identity (eval)

        # ---- feed-forward ----
        residual = xf
        h1 = _gelu_new(jnp.dot(xf, w1_ref[l], preferred_element_type=jnp.float32) + b1_ref[l][0])
        h2 = jnp.dot(h1, w2_ref[l], preferred_element_type=jnp.float32) + b2_ref[l][0]
        xf = _layer_norm(residual + h2, ln[2], ln[3])

    # NOTE: torch's isinf/isnan-guarded clamp is a no-op for finite fp32 activations -> dropped.
    o_ref[...] = xf.reshape(B, S, E)


# ---------------- wrapper ----------------
def bart_encoder(inputs_embeds, attention_mask, p):
    """inputs_embeds: (batch, seq, embed) fp32; attention_mask: (batch, seq), 1=token, 0=pad."""
    x = inputs_embeds.astype(jnp.float32)
    # sequential position ids: arange(padding_idx+1, seq+padding_idx+1)
    pos = p["pos_table"][PAD_IDX + 1:PAD_IDX + 1 + SEQ]                        # (S, E)
    # invert_mask (1->keep, 0->pad) expressed as an additive bias
    bias = jnp.where(attention_mask == 0, NEG_BIAS, 0.0).astype(jnp.float32)
    bias = bias.reshape(BATCH, 1, SEQ)

    args = (x, pos, bias, p["emb_ln"],
            p["wqkv"], p["bqkv"], p["wo"], p["bo"],
            p["w1"], p["b1"], p["w2"], p["b2"], p["ln"])

    # No grid, no BlockSpecs: every operand is tiny and lands whole in VMEM; the
    # kernel is invoked exactly once (removes all per-grid-step overhead).
    return pl.pallas_call(
        bart_encoder_kernel,
        out_shape=jax.ShapeDtypeStruct((BATCH, SEQ, D_MODEL), jnp.float32),
    )(*args)


# ---------------- pure-JAX reference ----------------
def bart_encoder_ref(inputs_embeds, attention_mask, p):
    B, S, E, H, Dh = BATCH, SEQ, D_MODEL, N_HEADS, HEAD_DIM
    pos = p["pos_table"][PAD_IDX + 1:PAD_IDX + 1 + S]
    h = inputs_embeds.astype(jnp.float32) + pos[None]
    h = _layer_norm(h, p["emb_ln"][0], p["emb_ln"][1])
    pad = (attention_mask == 0)                                    # True at padded keys
    for l in range(N_LAYERS):
        residual = h
        qkv = h @ p["wqkv"][l] + p["bqkv"][l, 0]
        q = (qkv[..., :E] * SCALING).reshape(B, S, H, Dh).transpose(0, 2, 1, 3)
        k = qkv[..., E:2 * E].reshape(B, S, H, Dh).transpose(0, 2, 1, 3)
        v = qkv[..., 2 * E:].reshape(B, S, H, Dh).transpose(0, 2, 1, 3)
        s = jnp.einsum("bhqd,bhkd->bhqk", q, k)
        s = jnp.where(pad[:, None, None, :], -jnp.inf, s)
        w = jax.nn.softmax(s, axis=-1)
        attn = jnp.einsum("bhqk,bhkd->bhqd", w, v).transpose(0, 2, 1, 3).reshape(B, S, E)
        attn = attn @ p["wo"][l] + p["bo"][l, 0]
        h = _layer_norm(residual + attn, p["ln"][l, 0], p["ln"][l, 1])
        residual = h
        ff = _gelu_new(h @ p["w1"][l] + p["b1"][l, 0]) @ p["w2"][l] + p["b2"][l, 0]
        h = _layer_norm(residual + ff, p["ln"][l, 2], p["ln"][l, 3])
    return h


# ---------------- deterministic parameter init (packed layout) ----------------
def init_params(key):
    ks = jax.random.split(key, 13)
    std = 0.02
    L, E, F = N_LAYERS, D_MODEL, FFN_DIM

    def nrm(k, shape):
        return std * jax.random.normal(k, shape, jnp.float32)

    emb_ln = nrm(ks[1], (2, E)).at[0].add(1.0)            # gamma ~ 1, beta ~ 0
    ln = nrm(ks[11], (L, 4, E)).at[:, 0, :].add(1.0).at[:, 2, :].add(1.0)

    return {
        "pos_table": nrm(ks[0], (MAX_POS + 2, E)),
        "emb_ln": emb_ln,
        "wqkv": nrm(ks[2], (L, E, 3 * E)),
        "bqkv": nrm(ks[3], (L, 1, 3 * E)),
        "wo":   nrm(ks[4], (L, E, E)),
        "bo":   nrm(ks[5], (L, 1, E)),
        "w1":   nrm(ks[6], (L, E, F)),
        "b1":   nrm(ks[7], (L, 1, F)),
        "w2":   nrm(ks[8], (L, F, E)),
        "b2":   nrm(ks[9], (L, 1, E)),
        "ln":   ln,
    }


if __name__ == "__main__":
    key = jax.random.PRNGKey(0)
    k_x, k_p = jax.random.split(key)

    inputs_embeds = jax.random.normal(k_x, (BATCH, SEQ, D_MODEL), jnp.float32)  # (B, S, E)
    # attention_mask (batch, src_len): 1 => real token, 0 => padded. Batch 1: last 2 padded.
    attention_mask = jnp.ones((BATCH, SEQ), jnp.int32).at[1, SEQ - 2:].set(0)
    params = init_params(k_p)

    out = jax.jit(bart_encoder)(inputs_embeds, attention_mask, params)
    out = jax.block_until_ready(out)

    ref = bart_encoder_ref(inputs_embeds, attention_mask, params)
    assert out.shape == (BATCH, SEQ, D_MODEL)
    # tolerance relaxed slightly for pl.reciprocal(approx=True) in the softmax denominator
    assert jnp.allclose(out, ref, atol=2e-3, rtol=2e-3), "kernel / reference mismatch"

    # TODO(synk): dropout / layerdrop / output_attentions are eval-mode identities here;
    # training-mode dropout would need pltpu.prng_* in-kernel.
    print("KERNEL_OK")
</pallas_src>

<mosaic_0001>
module attributes {stable_mosaic.version = 11 : i64} {
  func.func @bart_encoder_kernel(%arg0: memref<2x8x32xf32, #tpu.memory_space<vmem>>, %arg1: memref<8x32xf32, #tpu.memory_space<vmem>>, %arg2: memref<2x1x8xf32, #tpu.memory_space<vmem>>, %arg3: memref<2x32xf32, #tpu.memory_space<vmem>>, %arg4: memref<2x32x96xf32, #tpu.memory_space<vmem>>, %arg5: memref<2x1x96xf32, #tpu.memory_space<vmem>>, %arg6: memref<2x32x32xf32, #tpu.memory_space<vmem>>, %arg7: memref<2x1x32xf32, #tpu.memory_space<vmem>>, %arg8: memref<2x32x64xf32, #tpu.memory_space<vmem>>, %arg9: memref<2x1x64xf32, #tpu.memory_space<vmem>>, %arg10: memref<2x64x32xf32, #tpu.memory_space<vmem>>, %arg11: memref<2x1x32xf32, #tpu.memory_space<vmem>>, %arg12: memref<2x4x32xf32, #tpu.memory_space<vmem>>, %arg13: memref<2x8x32xf32, #tpu.memory_space<vmem>>) attributes {dimension_semantics = [], scalar_prefetch = 0 : i64, scratch_operands = 0 : i64, tpu.core_type = #tpu.core_type<tc>} {
    %c0 = arith.constant 0 : index
    %c0_0 = arith.constant 0 : index
    %c0_1 = arith.constant 0 : index
    %0 = vector.load %arg0[%c0, %c0_0, %c0_1] : memref<2x8x32xf32, #tpu.memory_space<vmem>>, vector<2x8x32xf32>
    %c0_2 = arith.constant 0 : index
    %c0_3 = arith.constant 0 : index
    %1 = vector.load %arg1[%c0_2, %c0_3] : memref<8x32xf32, #tpu.memory_space<vmem>>, vector<8x32xf32>
    %2 = vector.shape_cast %1 : vector<8x32xf32> to vector<1x8x32xf32>
    %3 = vector.broadcast %2 : vector<1x8x32xf32> to vector<2x8x32xf32>
    %4 = arith.addf %0, %3 : vector<2x8x32xf32>
    %c0_4 = arith.constant 0 : index
    %c0_5 = arith.constant 0 : index
    %5 = vector.load %arg3[%c0_4, %c0_5] : memref<2x32xf32, #tpu.memory_space<vmem>>, vector<2x32xf32>
    %6 = vector.shape_cast %4 : vector<2x8x32xf32> to vector<16x32xf32>
    %7 = vector.extract_strided_slice %5 {offsets = [0, 0], sizes = [1, 32], strides = [1, 1]} : vector<2x32xf32> to vector<1x32xf32>
    %8 = vector.shape_cast %7 : vector<1x32xf32> to vector<32xf32>
    %9 = vector.extract_strided_slice %5 {offsets = [1, 0], sizes = [1, 32], strides = [1, 1]} : vector<2x32xf32> to vector<1x32xf32>
    %10 = vector.shape_cast %9 : vector<1x32xf32> to vector<32xf32>
    %cst = arith.constant dense<0.000000e+00> : vector<16xf32>
    %11 = vector.multi_reduction <add>, %6, %cst [1] : vector<16x32xf32> to vector<16xf32>
    %12 = vector.shape_cast %11 : vector<16xf32> to vector<16x1xf32>
    %cst_6 = arith.constant 3.200000e+01 : f32
    %13 = vector.broadcast %cst_6 : f32 to vector<16x1xf32>
    %14 = arith.divf %12, %13 : vector<16x1xf32>
    %15 = vector.broadcast %14 : vector<16x1xf32> to vector<16x32xf32>
    %16 = arith.subf %6, %15 : vector<16x32xf32>
    %17 = arith.mulf %16, %16 : vector<16x32xf32>
    %cst_7 = arith.constant dense<0.000000e+00> : vector<16xf32>
    %18 = vector.multi_reduction <add>, %17, %cst_7 [1] : vector<16x32xf32> to vector<16xf32>
    %19 = vector.shape_cast %18 : vector<16xf32> to vector<16x1xf32>
    %cst_8 = arith.constant 3.200000e+01 : f32
    %20 = vector.broadcast %cst_8 : f32 to vector<16x1xf32>
    %21 = arith.divf %19, %20 : vector<16x1xf32>
    %22 = vector.broadcast %14 : vector<16x1xf32> to vector<16x32xf32>
    %23 = arith.subf %6, %22 : vector<16x32xf32>
    %cst_9 = arith.constant 9.99999974E-6 : f32
    %24 = vector.broadcast %cst_9 : f32 to vector<16x1xf32>
    %25 = arith.addf %21, %24 : vector<16x1xf32>
    %26 = math.rsqrt %25 : vector<16x1xf32>
    %27 = vector.broadcast %26 : vector<16x1xf32> to vector<16x32xf32>
    %28 = arith.mulf %23, %27 : vector<16x32xf32>
    %29 = vector.shape_cast %8 : vector<32xf32> to vector<1x32xf32>
    %30 = vector.broadcast %29 : vector<1x32xf32> to vector<16x32xf32>
    %31 = arith.mulf %28, %30 : vector<16x32xf32>
    %32 = vector.shape_cast %10 : vector<32xf32> to vector<1x32xf32>
    %33 = vector.broadcast %32 : vector<1x32xf32> to vector<16x32xf32>
    %34 = arith.addf %31, %33 : vector<16x32xf32>
    %c0_10 = arith.constant 0 : index
    %c0_11 = arith.constant 0 : index
    %c0_12 = arith.constant 0 : index
    %35 = vector.load %arg2[%c0_10, %c0_11, %c0_12] : memref<2x1x8xf32, #tpu.memory_space<vmem>>, vector<2x1x8xf32>
    %c0_13 = arith.constant 0 : index
    %c0_14 = arith.constant 0 : index
    %c0_15 = arith.constant 0 : index
    %36 = vector.load %arg12[%c0_13, %c0_14, %c0_15] : memref<2x4x32xf32, #tpu.memory_space<vmem>>, vector<1x4x32xf32>
    %37 = vector.shape_cast %36 : vector<1x4x32xf32> to vector<4x32xf32>
    %c0_16 = arith.constant 0 : index
    %c0_17 = arith.constant 0 : index
    %c0_18 = arith.constant 0 : index
    %38 = vector.load %arg4[%c0_16, %c0_17, %c0_18] : memref<2x32x96xf32, #tpu.memory_space<vmem>>, vector<1x32x96xf32>
    %39 = vector.shape_cast %38 : vector<1x32x96xf32> to vector<32x96xf32>
    %cst_19 = arith.constant dense<0.000000e+00> : vector<16x96xf32>
    %40 = tpu.matmul %34, %39, %cst_19 {dimension_numbers = #tpu.dot_dimension_numbers<[1], [0], [0], [1], [0, 0, 1, 1], [], []>} : vector<16x32xf32>, vector<32x96xf32>, vector<16x96xf32> -> vector<16x96xf32>
    %c0_20 = arith.constant 0 : index
    %c0_21 = arith.constant 0 : index
    %c0_22 = arith.constant 0 : index
    %41 = vector.load %arg5[%c0_20, %c0_21, %c0_22] : memref<2x1x96xf32, #tpu.memory_space<vmem>>, vector<1x1x96xf32>
    %42 = vector.shape_cast %41 : vector<1x1x96xf32> to vector<1x96xf32>
    %43 = vector.shape_cast %42 : vector<1x96xf32> to vector<96xf32>
    %44 = vector.shape_cast %43 : vector<96xf32> to vector<1x96xf32>
    %45 = vector.broadcast %44 : vector<1x96xf32> to vector<16x96xf32>
    %46 = arith.addf %40, %45 : vector<16x96xf32>
    %47 = vector.extract_strided_slice %46 {offsets = [0, 0], sizes = [16, 32], strides = [1, 1]} : vector<16x96xf32> to vector<16x32xf32>
    %cst_23 = arith.constant 0.353553385 : f32
    %48 = vector.broadcast %cst_23 : f32 to vector<16x32xf32>
    %49 = arith.mulf %47, %48 : vector<16x32xf32>
    %50 = vector.shape_cast %49 : vector<16x32xf32> to vector<2x8x32xf32>
    %51 = vector.extract_strided_slice %46 {offsets = [0, 32], sizes = [16, 32], strides = [1, 1]} : vector<16x96xf32> to vector<16x32xf32>
    %52 = vector.shape_cast %51 : vector<16x32xf32> to vector<2x8x32xf32>
    %53 = vector.extract_strided_slice %46 {offsets = [0, 64], sizes = [16, 32], strides = [1, 1]} : vector<16x96xf32> to vector<16x32xf32>
    %54 = vector.shape_cast %53 : vector<16x32xf32> to vector<2x8x32xf32>
    %55 = vector.extract_strided_slice %50 {offsets = [0, 0, 0], sizes = [2, 8, 8], strides = [1, 1, 1]} : vector<2x8x32xf32> to vector<2x8x8xf32>
    %56 = vector.extract_strided_slice %52 {offsets = [0, 0, 0], sizes = [2, 8, 8], strides = [1, 1, 1]} : vector<2x8x32xf32> to vector<2x8x8xf32>
    "tpu.trace_start"() <{level = 10 : i32, message = "bqd,bkd->bqk"}> : () -> ()
    %cst_24 = arith.constant dense<0.000000e+00> : vector<2x8x8xf32>
    %57 = tpu.matmul %55, %56, %cst_24 {dimension_numbers = #tpu.dot_dimension_numbers<[2], [2], [1], [1], [0, 0, 0, 1, 1, 1], [0], [0]>} : vector<2x8x8xf32>, vector<2x8x8xf32>, vector<2x8x8xf32> -> vector<2x8x8xf32>
    "tpu.trace_stop"() : () -> ()
    %58 = vector.broadcast %35 : vector<2x1x8xf32> to vector<2x8x8xf32>
    %59 = arith.addf %57, %58 : vector<2x8x8xf32>
    %cst_25 = arith.constant dense<0xFF800000> : vector<2x8xf32>
    %60 = vector.multi_reduction <maximumf>, %59, %cst_25 [2] : vector<2x8x8xf32> to vector<2x8xf32>
    %61 = vector.shape_cast %60 : vector<2x8xf32> to vector<2x8x1xf32>
    %62 = vector.broadcast %61 : vector<2x8x1xf32> to vector<2x8x8xf32>
    %63 = arith.subf %59, %62 : vector<2x8x8xf32>
    %64 = math.exp %63 : vector<2x8x8xf32>
    %cst_26 = arith.constant dense<0.000000e+00> : vector<2x8xf32>
    %65 = vector.multi_reduction <add>, %64, %cst_26 [2] : vector<2x8x8xf32> to vector<2x8xf32>
    %66 = vector.shape_cast %65 : vector<2x8xf32> to vector<2x8x1xf32>
    %67 = tpu.reciprocal %66 {approx = true} : vector<2x8x1xf32> -> vector<2x8x1xf32>
    %68 = vector.broadcast %67 : vector<2x8x1xf32> to vector<2x8x8xf32>
    %69 = arith.mulf %64, %68 : vector<2x8x8xf32>
    %70 = vector.extract_strided_slice %54 {offsets = [0, 0, 0], sizes = [2, 8, 8], strides = [1, 1, 1]} : vector<2x8x32xf32> to vector<2x8x8xf32>
    "tpu.trace_start"() <{level = 10 : i32, message = "bqk,bkd->bqd"}> : () -> ()
    %cst_27 = arith.constant dense<0.000000e+00> : vector<2x8x8xf32>
    %71 = tpu.matmul %69, %70, %cst_27 {dimension_numbers = #tpu.dot_dimension_numbers<[2], [1], [1], [2], [0, 0, 0, 1, 1, 2], [0], [0]>} : vector<2x8x8xf32>, vector<2x8x8xf32>, vector<2x8x8xf32> -> vector<2x8x8xf32>
    "tpu.trace_stop"() : () -> ()
    %72 = vector.extract_strided_slice %50 {offsets = [0, 0, 8], sizes = [2, 8, 8], strides = [1, 1, 1]} : vector<2x8x32xf32> to vector<2x8x8xf32>
    %73 = vector.extract_strided_slice %52 {offsets = [0, 0, 8], sizes = [2, 8, 8], strides = [1, 1, 1]} : vector<2x8x32xf32> to vector<2x8x8xf32>
    "tpu.trace_start"() <{level = 10 : i32, message = "bqd,bkd->bqk"}> : () -> ()
    %cst_28 = arith.constant dense<0.000000e+00> : vector<2x8x8xf32>
    %74 = tpu.matmul %72, %73, %cst_28 {dimension_numbers = #tpu.dot_dimension_numbers<[2], [2], [1], [1], [0, 0, 0, 1, 1, 1], [0], [0]>} : vector<2x8x8xf32>, vector<2x8x8xf32>, vector<2x8x8xf32> -> vector<2x8x8xf32>
    "tpu.trace_stop"() : () -> ()
    %75 = vector.broadcast %35 : vector<2x1x8xf32> to vector<2x8x8xf32>
    %76 = arith.addf %74, %75 : vector<2x8x8xf32>
    %cst_29 = arith.constant dense<0xFF800000> : vector<2x8xf32>
    %77 = vector.multi_reduction <maximumf>, %76, %cst_29 [2] : vector<2x8x8xf32> to vector<2x8xf32>
    %78 = vector.shape_cast %77 : vector<2x8xf32> to vector<2x8x1xf32>
    %79 = vector.broadcast %78 : vector<2x8x1xf32> to vector<2x8x8xf32>
    %80 = arith.subf %76, %79 : vector<2x8x8xf32>
    %81 = math.exp %80 : vector<2x8x8xf32>
    %cst_30 = arith.constant dense<0.000000e+00> : vector<2x8xf32>
    %82 = vector.multi_reduction <add>, %81, %cst_30 [2] : vector<2x8x8xf32> to vector<2x8xf32>
    %83 = vector.shape_cast %82 : vector<2x8xf32> to vector<2x8x1xf32>
    %84 = tpu.reciprocal %83 {approx = true} : vector<2x8x1xf32> -> vector<2x8x1xf32>
    %85 = vector.broadcast %84 : vector<2x8x1xf32> to vector<2x8x8xf32>
    %86 = arith.mulf %81, %85 : vector<2x8x8xf32>
    %87 = vector.extract_strided_slice %54 {offsets = [0, 0, 8], sizes = [2, 8, 8], strides = [1, 1, 1]} : vector<2x8x32xf32> to vector<2x8x8xf32>
    "tpu.trace_start"() <{level = 10 : i32, message = "bqk,bkd->bqd"}> : () -> ()
    %cst_31 = arith.constant dense<0.000000e+00> : vector<2x8x8xf32>
    %88 = tpu.matmul %86, %87, %cst_31 {dimension_numbers = #tpu.dot_dimension_numbers<[2], [1], [1], [2], [0, 0, 0, 1, 1, 2], [0], [0]>} : vector<2x8x8xf32>, vector<2x8x8xf32>, vector<2x8x8xf32> -> vector<2x8x8xf32>
    "tpu.trace_stop"() : () -> ()
    %89 = vector.extract_strided_slice %50 {offsets = [0, 0, 16], sizes = [2, 8, 8], strides = [1, 1, 1]} : vector<2x8x32xf32> to vector<2x8x8xf32>
    %90 = vector.extract_strided_slice %52 {offsets = [0, 0, 16], sizes = [2, 8, 8], strides = [1, 1, 1]} : vector<2x8x32xf32> to vector<2x8x8xf32>
    "tpu.trace_start"() <{level = 10 : i32, message = "bqd,bkd->bqk"}> : () -> ()
    %cst_32 = arith.constant dense<0.000000e+00> : vector<2x8x8xf32>
    %91 = tpu.matmul %89, %90, %cst_32 {dimension_numbers = #tpu.dot_dimension_numbers<[2], [2], [1], [1], [0, 0, 0, 1, 1, 1], [0], [0]>} : vector<2x8x8xf32>, vector<2x8x8xf32>, vector<2x8x8xf32> -> vector<2x8x8xf32>
    "tpu.trace_stop"() : () -> ()
    %92 = vector.broadcast %35 : vector<2x1x8xf32> to vector<2x8x8xf32>
    %93 = arith.addf %91, %92 : vector<2x8x8xf32>
    %cst_33 = arith.constant dense<0xFF800000> : vector<2x8xf32>
    %94 = vector.multi_reduction <maximumf>, %93, %cst_33 [2] : vector<2x8x8xf32> to vector<2x8xf32>
    %95 = vector.shape_cast %94 : vector<2x8xf32> to vector<2x8x1xf32>
    %96 = vector.broadcast %95 : vector<2x8x1xf32> to vector<2x8x8xf32>
    %97 = arith.subf %93, %96 : vector<2x8x8xf32>
    %98 = math.exp %97 : vector<2x8x8xf32>
    %cst_34 = arith.constant dense<0.000000e+00> : vector<2x8xf32>
    %99 = vector.multi_reduction <add>, %98, %cst_34 [2] : vector<2x8x8xf32> to vector<2x8xf32>
    %100 = vector.shape_cast %99 : vector<2x8xf32> to vector<2x8x1xf32>
    %101 = tpu.reciprocal %100 {approx = true} : vector<2x8x1xf32> -> vector<2x8x1xf32>
    %102 = vector.broadcast %101 : vector<2x8x1xf32> to vector<2x8x8xf32>
    %103 = arith.mulf %98, %102 : vector<2x8x8xf32>
    %104 = vector.extract_strided_slice %54 {offsets = [0, 0, 16], sizes = [2, 8, 8], strides = [1, 1, 1]} : vector<2x8x32xf32> to vector<2x8x8xf32>
    "tpu.trace_start"() <{level = 10 : i32, message = "bqk,bkd->bqd"}> : () -> ()
    %cst_35 = arith.constant dense<0.000000e+00> : vector<2x8x8xf32>
    %105 = tpu.matmul %103, %104, %cst_35 {dimension_numbers = #tpu.dot_dimension_numbers<[2], [1], [1], [2], [0, 0, 0, 1, 1, 2], [0], [0]>} : vector<2x8x8xf32>, vector<2x8x8xf32>, vector<2x8x8xf32> -> vector<2x8x8xf32>
    "tpu.trace_stop"() : () -> ()
    %106 = vector.extract_strided_slice %50 {offsets = [0, 0, 24], sizes = [2, 8, 8], strides = [1, 1, 1]} : vector<2x8x32xf32> to vector<2x8x8xf32>
    %107 = vector.extract_strided_slice %52 {offsets = [0, 0, 24], sizes = [2, 8, 8], strides = [1, 1, 1]} : vector<2x8x32xf32> to vector<2x8x8xf32>
    "tpu.trace_start"() <{level = 10 : i32, message = "bqd,bkd->bqk"}> : () -> ()
    %cst_36 = arith.constant dense<0.000000e+00> : vector<2x8x8xf32>
    %108 = tpu.matmul %106, %107, %cst_36 {dimension_numbers = #tpu.dot_dimension_numbers<[2], [2], [1], [1], [0, 0, 0, 1, 1, 1], [0], [0]>} : vector<2x8x8xf32>, vector<2x8x8xf32>, vector<2x8x8xf32> -> vector<2x8x8xf32>
    "tpu.trace_stop"() : () -> ()
    %109 = vector.broadcast %35 : vector<2x1x8xf32> to vector<2x8x8xf32>
    %110 = arith.addf %108, %109 : vector<2x8x8xf32>
    %cst_37 = arith.constant dense<0xFF800000> : vector<2x8xf32>
    %111 = vector.multi_reduction <maximumf>, %110, %cst_37 [2] : vector<2x8x8xf32> to vector<2x8xf32>
    %112 = vector.shape_cast %111 : vector<2x8xf32> to vector<2x8x1xf32>
    %113 = vector.broadcast %112 : vector<2x8x1xf32> to vector<2x8x8xf32>
    %114 = arith.subf %110, %113 : vector<2x8x8xf32>
    %115 = math.exp %114 : vector<2x8x8xf32>
    %cst_38 = arith.constant dense<0.000000e+00> : vector<2x8xf32>
    %116 = vector.multi_reduction <add>, %115, %cst_38 [2] : vector<2x8x8xf32> to vector<2x8xf32>
    %117 = vector.shape_cast %116 : vector<2x8xf32> to vector<2x8x1xf32>
    %118 = tpu.reciprocal %117 {approx = true} : vector<2x8x1xf32> -> vector<2x8x1xf32>
    %119 = vector.broadcast %118 : vector<2x8x1xf32> to vector<2x8x8xf32>
    %120 = arith.mulf %115, %119 : vector<2x8x8xf32>
    %121 = vector.extract_strided_slice %54 {offsets = [0, 0, 24], sizes = [2, 8, 8], strides = [1, 1, 1]} : vector<2x8x32xf32> to vector<2x8x8xf32>
    "tpu.trace_start"() <{level = 10 : i32, message = "bqk,bkd->bqd"}> : () -> ()
    %cst_39 = arith.constant dense<0.000000e+00> : vector<2x8x8xf32>
    %122 = tpu.matmul %120, %121, %cst_39 {dimension_numbers = #tpu.dot_dimension_numbers<[2], [1], [1], [2], [0, 0, 0, 1, 1, 2], [0], [0]>} : vector<2x8x8xf32>, vector<2x8x8xf32>, vector<2x8x8xf32> -> vector<2x8x8xf32>
    "tpu.trace_stop"() : () -> ()
    %123 = tpu.concatenate %71, %88, %105, %122 in 2 : vector<2x8x8xf32>, vector<2x8x8xf32>, vector<2x8x8xf32>, vector<2x8x8xf32> -> vector<2x8x32xf32>
    %124 = vector.shape_cast %123 : vector<2x8x32xf32> to vector<16x32xf32>
    %c0_40 = arith.constant 0 : index
    %c0_41 = arith.constant 0 : index
    %c0_42 = arith.constant 0 : index
    %125 = vector.load %arg6[%c0_40, %c0_41, %c0_42] : memref<2x32x32xf32, #tpu.memory_space<vmem>>, vector<1x32x32xf32>
    %126 = vector.shape_cast %125 : vector<1x32x32xf32> to vector<32x32xf32>
    %cst_43 = arith.constant dense<0.000000e+00> : vector<16x32xf32>
    %127 = tpu.matmul %124, %126, %cst_43 {dimension_numbers = #tpu.dot_dimension_numbers<[1], [0], [0], [1], [0, 0, 1, 1], [], []>} : vector<16x32xf32>, vector<32x32xf32>, vector<16x32xf32> -> vector<16x32xf32>
    %c0_44 = arith.constant 0 : index
    %c0_45 = arith.constant 0 : index
    %c0_46 = arith.constant 0 : index
    %128 = vector.load %arg7[%c0_44, %c0_45, %c0_46] : memref<2x1x32xf32, #tpu.memory_space<vmem>>, vector<1x1x32xf32>
    %129 = vector.shape_cast %128 : vector<1x1x32xf32> to vector<1x32xf32>
    %130 = vector.shape_cast %129 : vector<1x32xf32> to vector<32xf32>
    %131 = vector.shape_cast %130 : vector<32xf32> to vector<1x32xf32>
    %132 = vector.broadcast %131 : vector<1x32xf32> to vector<16x32xf32>
    %133 = arith.addf %127, %132 : vector<16x32xf32>
    %134 = arith.addf %34, %133 : vector<16x32xf32>
    %135 = vector.extract_strided_slice %37 {offsets = [0, 0], sizes = [1, 32], strides = [1, 1]} : vector<4x32xf32> to vector<1x32xf32>
    %136 = vector.shape_cast %135 : vector<1x32xf32> to vector<32xf32>
    %137 = vector.extract_strided_slice %37 {offsets = [1, 0], sizes = [1, 32], strides = [1, 1]} : vector<4x32xf32> to vector<1x32xf32>
    %138 = vector.shape_cast %137 : vector<1x32xf32> to vector<32xf32>
    %cst_47 = arith.constant dense<0.000000e+00> : vector<16xf32>
    %139 = vector.multi_reduction <add>, %134, %cst_47 [1] : vector<16x32xf32> to vector<16xf32>
    %140 = vector.shape_cast %139 : vector<16xf32> to vector<16x1xf32>
    %cst_48 = arith.constant 3.200000e+01 : f32
    %141 = vector.broadcast %cst_48 : f32 to vector<16x1xf32>
    %142 = arith.divf %140, %141 : vector<16x1xf32>
    %143 = vector.broadcast %142 : vector<16x1xf32> to vector<16x32xf32>
    %144 = arith.subf %134, %143 : vector<16x32xf32>
    %145 = arith.mulf %144, %144 : vector<16x32xf32>
    %cst_49 = arith.constant dense<0.000000e+00> : vector<16xf32>
    %146 = vector.multi_reduction <add>, %145, %cst_49 [1] : vector<16x32xf32> to vector<16xf32>
    %147 = vector.shape_cast %146 : vector<16xf32> to vector<16x1xf32>
    %cst_50 = arith.constant 3.200000e+01 : f32
    %148 = vector.broadcast %cst_50 : f32 to vector<16x1xf32>
    %149 = arith.divf %147, %148 : vector<16x1xf32>
    %150 = vector.broadcast %142 : vector<16x1xf32> to vector<16x32xf32>
    %151 = arith.subf %134, %150 : vector<16x32xf32>
    %cst_51 = arith.constant 9.99999974E-6 : f32
    %152 = vector.broadcast %cst_51 : f32 to vector<16x1xf32>
    %153 = arith.addf %149, %152 : vector<16x1xf32>
    %154 = math.rsqrt %153 : vector<16x1xf32>
    %155 = vector.broadcast %154 : vector<16x1xf32> to vector<16x32xf32>
    %156 = arith.mulf %151, %155 : vector<16x32xf32>
    %157 = vector.shape_cast %136 : vector<32xf32> to vector<1x32xf32>
    %158 = vector.broadcast %157 : vector<1x32xf32> to vector<16x32xf32>
    %159 = arith.mulf %156, %158 : vector<16x32xf32>
    %160 = vector.shape_cast %138 : vector<32xf32> to vector<1x32xf32>
    %161 = vector.broadcast %160 : vector<1x32xf32> to vector<16x32xf32>
    %162 = arith.addf %159, %161 : vector<16x32xf32>
    %c0_52 = arith.constant 0 : index
    %c0_53 = arith.constant 0 : index
    %c0_54 = arith.constant 0 : index
    %163 = vector.load %arg8[%c0_52, %c0_53, %c0_54] : memref<2x32x64xf32, #tpu.memory_space<vmem>>, vector<1x32x64xf32>
    %164 = vector.shape_cast %163 : vector<1x32x64xf32> to vector<32x64xf32>
    %cst_55 = arith.constant dense<0.000000e+00> : vector<16x64xf32>
    %165 = tpu.matmul %162, %164, %cst_55 {dimension_numbers = #tpu.dot_dimension_numbers<[1], [0], [0], [1], [0, 0, 1, 1], [], []>} : vector<16x32xf32>, vector<32x64xf32>, vector<16x64xf32> -> vector<16x64xf32>
    %c0_56 = arith.constant 0 : index
    %c0_57 = arith.constant 0 : index
    %c0_58 = arith.constant 0 : index
    %166 = vector.load %arg9[%c0_56, %c0_57, %c0_58] : memref<2x1x64xf32, #tpu.memory_space<vmem>>, vector<1x1x64xf32>
    %167 = vector.shape_cast %166 : vector<1x1x64xf32> to vector<1x64xf32>
    %168 = vector.shape_cast %167 : vector<1x64xf32> to vector<64xf32>
    %169 = vector.shape_cast %168 : vector<64xf32> to vector<1x64xf32>
    %170 = vector.broadcast %169 : vector<1x64xf32> to vector<16x64xf32>
    %171 = arith.addf %165, %170 : vector<16x64xf32>
    %cst_59 = arith.constant 5.000000e-01 : f32
    %172 = vector.broadcast %cst_59 : f32 to vector<16x64xf32>
    %173 = arith.mulf %172, %171 : vector<16x64xf32>
    %cst_60 = arith.constant 0.636619746 : f32
    %174 = math.sqrt %cst_60 : f32
    %cst_61 = arith.constant 4.471500e-02 : f32
    %175 = vector.broadcast %cst_61 : f32 to vector<16x64xf32>
    %176 = arith.mulf %175, %171 : vector<16x64xf32>
    %177 = arith.mulf %176, %171 : vector<16x64xf32>
    %178 = arith.mulf %177, %171 : vector<16x64xf32>
    %179 = arith.addf %171, %178 : vector<16x64xf32>
    %180 = vector.broadcast %174 : f32 to vector<16x64xf32>
    %181 = arith.mulf %180, %179 : vector<16x64xf32>
    %182 = math.tanh %181 : vector<16x64xf32>
    %cst_62 = arith.constant 1.000000e+00 : f32
    %183 = vector.broadcast %cst_62 : f32 to vector<16x64xf32>
    %184 = arith.addf %183, %182 : vector<16x64xf32>
    %185 = arith.mulf %173, %184 : vector<16x64xf32>
    %c0_63 = arith.constant 0 : index
    %c0_64 = arith.constant 0 : index
    %c0_65 = arith.constant 0 : index
    %186 = vector.load %arg10[%c0_63, %c0_64, %c0_65] : memref<2x64x32xf32, #tpu.memory_space<vmem>>, vector<1x64x32xf32>
    %187 = vector.shape_cast %186 : vector<1x64x32xf32> to vector<64x32xf32>
    %cst_66 = arith.constant dense<0.000000e+00> : vector<16x32xf32>
    %188 = tpu.matmul %185, %187, %cst_66 {dimension_numbers = #tpu.dot_dimension_numbers<[1], [0], [0], [1], [0, 0, 1, 1], [], []>} : vector<16x64xf32>, vector<64x32xf32>, vector<16x32xf32> -> vector<16x32xf32>
    %c0_67 = arith.constant 0 : index
    %c0_68 = arith.constant 0 : index
    %c0_69 = arith.constant 0 : index
    %189 = vector.load %arg11[%c0_67, %c0_68, %c0_69] : memref<2x1x32xf32, #tpu.memory_space<vmem>>, vector<1x1x32xf32>
    %190 = vector.shape_cast %189 : vector<1x1x32xf32> to vector<1x32xf32>
    %191 = vector.shape_cast %190 : vector<1x32xf32> to vector<32xf32>
    %192 = vector.shape_cast %191 : vector<32xf32> to vector<1x32xf32>
    %193 = vector.broadcast %192 : vector<1x32xf32> to vector<16x32xf32>
    %194 = arith.addf %188, %193 : vector<16x32xf32>
    %195 = arith.addf %162, %194 : vector<16x32xf32>
    %196 = vector.extract_strided_slice %37 {offsets = [2, 0], sizes = [1, 32], strides = [1, 1]} : vector<4x32xf32> to vector<1x32xf32>
    %197 = vector.shape_cast %196 : vector<1x32xf32> to vector<32xf32>
    %198 = vector.extract_strided_slice %37 {offsets = [3, 0], sizes = [1, 32], strides = [1, 1]} : vector<4x32xf32> to vector<1x32xf32>
    %199 = vector.shape_cast %198 : vector<1x32xf32> to vector<32xf32>
    %cst_70 = arith.constant dense<0.000000e+00> : vector<16xf32>
    %200 = vector.multi_reduction <add>, %195, %cst_70 [1] : vector<16x32xf32> to vector<16xf32>
    %201 = vector.shape_cast %200 : vector<16xf32> to vector<16x1xf32>
    %cst_71 = arith.constant 3.200000e+01 : f32
    %202 = vector.broadcast %cst_71 : f32 to vector<16x1xf32>
    %203 = arith.divf %201, %202 : vector<16x1xf32>
    %204 = vector.broadcast %203 : vector<16x1xf32> to vector<16x32xf32>
    %205 = arith.subf %195, %204 : vector<16x32xf32>
    %206 = arith.mulf %205, %205 : vector<16x32xf32>
    %cst_72 = arith.constant dense<0.000000e+00> : vector<16xf32>
    %207 = vector.multi_reduction <add>, %206, %cst_72 [1] : vector<16x32xf32> to vector<16xf32>
    %208 = vector.shape_cast %207 : vector<16xf32> to vector<16x1xf32>
    %cst_73 = arith.constant 3.200000e+01 : f32
    %209 = vector.broadcast %cst_73 : f32 to vector<16x1xf32>
    %210 = arith.divf %208, %209 : vector<16x1xf32>
    %211 = vector.broadcast %203 : vector<16x1xf32> to vector<16x32xf32>
    %212 = arith.subf %195, %211 : vector<16x32xf32>
    %cst_74 = arith.constant 9.99999974E-6 : f32
    %213 = vector.broadcast %cst_74 : f32 to vector<16x1xf32>
    %214 = arith.addf %210, %213 : vector<16x1xf32>
    %215 = math.rsqrt %214 : vector<16x1xf32>
    %216 = vector.broadcast %215 : vector<16x1xf32> to vector<16x32xf32>
    %217 = arith.mulf %212, %216 : vector<16x32xf32>
    %218 = vector.shape_cast %197 : vector<32xf32> to vector<1x32xf32>
    %219 = vector.broadcast %218 : vector<1x32xf32> to vector<16x32xf32>
    %220 = arith.mulf %217, %219 : vector<16x32xf32>
    %221 = vector.shape_cast %199 : vector<32xf32> to vector<1x32xf32>
    %222 = vector.broadcast %221 : vector<1x32xf32> to vector<16x32xf32>
    %223 = arith.addf %220, %222 : vector<16x32xf32>
    %c1 = arith.constant 1 : index
    %c0_75 = arith.constant 0 : index
    %c0_76 = arith.constant 0 : index
    %224 = vector.load %arg12[%c1, %c0_75, %c0_76] : memref<2x4x32xf32, #tpu.memory_space<vmem>>, vector<1x4x32xf32>
    %225 = vector.shape_cast %224 : vector<1x4x32xf32> to vector<4x32xf32>
    %c1_77 = arith.constant 1 : index
    %c0_78 = arith.constant 0 : index
    %c0_79 = arith.constant 0 : index
    %226 = vector.load %arg4[%c1_77, %c0_78, %c0_79] : memref<2x32x96xf32, #tpu.memory_space<vmem>>, vector<1x32x96xf32>
    %227 = vector.shape_cast %226 : vector<1x32x96xf32> to vector<32x96xf32>
    %cst_80 = arith.constant dense<0.000000e+00> : vector<16x96xf32>
    %228 = tpu.matmul %223, %227, %cst_80 {dimension_numbers = #tpu.dot_dimension_numbers<[1], [0], [0], [1], [0, 0, 1, 1], [], []>} : vector<16x32xf32>, vector<32x96xf32>, vector<16x96xf32> -> vector<16x96xf32>
    %c1_81 = arith.constant 1 : index
    %c0_82 = arith.constant 0 : index
    %c0_83 = arith.constant 0 : index
    %229 = vector.load %arg5[%c1_81, %c0_82, %c0_83] : memref<2x1x96xf32, #tpu.memory_space<vmem>>, vector<1x1x96xf32>
    %230 = vector.shape_cast %229 : vector<1x1x96xf32> to vector<1x96xf32>
    %231 = vector.shape_cast %230 : vector<1x96xf32> to vector<96xf32>
    %232 = vector.shape_cast %231 : vector<96xf32> to vector<1x96xf32>
    %233 = vector.broadcast %232 : vector<1x96xf32> to vector<16x96xf32>
    %234 = arith.addf %228, %233 : vector<16x96xf32>
    %235 = vector.extract_strided_slice %234 {offsets = [0, 0], sizes = [16, 32], strides = [1, 1]} : vector<16x96xf32> to vector<16x32xf32>
    %cst_84 = arith.constant 0.353553385 : f32
    %236 = vector.broadcast %cst_84 : f32 to vector<16x32xf32>
    %237 = arith.mulf %235, %236 : vector<16x32xf32>
    %238 = vector.shape_cast %237 : vector<16x32xf32> to vector<2x8x32xf32>
    %239 = vector.extract_strided_slice %234 {offsets = [0, 32], sizes = [16, 32], strides = [1, 1]} : vector<16x96xf32> to vector<16x32xf32>
    %240 = vector.shape_cast %239 : vector<16x32xf32> to vector<2x8x32xf32>
    %241 = vector.extract_strided_slice %234 {offsets = [0, 64], sizes = [16, 32], strides = [1, 1]} : vector<16x96xf32> to vector<16x32xf32>
    %242 = vector.shape_cast %241 : vector<16x32xf32> to vector<2x8x32xf32>
    %243 = vector.extract_strided_slice %238 {offsets = [0, 0, 0], sizes = [2, 8, 8], strides = [1, 1, 1]} : vector<2x8x32xf32> to vector<2x8x8xf32>
    %244 = vector.extract_strided_slice %240 {offsets = [0, 0, 0], sizes = [2, 8, 8], strides = [1, 1, 1]} : vector<2x8x32xf32> to vector<2x8x8xf32>
    "tpu.trace_start"() <{level = 10 : i32, message = "bqd,bkd->bqk"}> : () -> ()
    %cst_85 = arith.constant dense<0.000000e+00> : vector<2x8x8xf32>
    %245 = tpu.matmul %243, %244, %cst_85 {dimension_numbers = #tpu.dot_dimension_numbers<[2], [2], [1], [1], [0, 0, 0, 1, 1, 1], [0], [0]>} : vector<2x8x8xf32>, vector<2x8x8xf32>, vector<2x8x8xf32> -> vector<2x8x8xf32>
    "tpu.trace_stop"() : () -> ()
    %246 = vector.broadcast %35 : vector<2x1x8xf32> to vector<2x8x8xf32>
    %247 = arith.addf %245, %246 : vector<2x8x8xf32>
    %cst_86 = arith.constant dense<0xFF800000> : vector<2x8xf32>
    %248 = vector.multi_reduction <maximumf>, %247, %cst_86 [2] : vector<2x8x8xf32> to vector<2x8xf32>
    %249 = vector.shape_cast %248 : vector<2x8xf32> to vector<2x8x1xf32>
    %250 = vector.broadcast %249 : vector<2x8x1xf32> to vector<2x8x8xf32>
    %251 = arith.subf %247, %250 : vector<2x8x8xf32>
    %252 = math.exp %251 : vector<2x8x8xf32>
    %cst_87 = arith.constant dense<0.000000e+00> : vector<2x8xf32>
    %253 = vector.multi_reduction <add>, %252, %cst_87 [2] : vector<2x8x8xf32> to vector<2x8xf32>
    %254 = vector.shape_cast %253 : vector<2x8xf32> to vector<2x8x1xf32>
    %255 = tpu.reciprocal %254 {approx = true} : vector<2x8x1xf32> -> vector<2x8x1xf32>
    %256 = vector.broadcast %255 : vector<2x8x1xf32> to vector<2x8x8xf32>
    %257 = arith.mulf %252, %256 : vector<2x8x8xf32>
    %258 = vector.extract_strided_slice %242 {offsets = [0, 0, 0], sizes = [2, 8, 8], strides = [1, 1, 1]} : vector<2x8x32xf32> to vector<2x8x8xf32>
    "tpu.trace_start"() <{level = 10 : i32, message = "bqk,bkd->bqd"}> : () -> ()
    %cst_88 = arith.constant dense<0.000000e+00> : vector<2x8x8xf32>
    %259 = tpu.matmul %257, %258, %cst_88 {dimension_numbers = #tpu.dot_dimension_numbers<[2], [1], [1], [2], [0, 0, 0, 1, 1, 2], [0], [0]>} : vector<2x8x8xf32>, vector<2x8x8xf32>, vector<2x8x8xf32> -> vector<2x8x8xf32>
    "tpu.trace_stop"() : () -> ()
    %260 = vector.extract_strided_slice %238 {offsets = [0, 0, 8], sizes = [2, 8, 8], strides = [1, 1, 1]} : vector<2x8x32xf32> to vector<2x8x8xf32>
    %261 = vector.extract_strided_slice %240 {offsets = [0, 0, 8], sizes = [2, 8, 8], strides = [1, 1, 1]} : vector<2x8x32xf32> to vector<2x8x8xf32>
    "tpu.trace_start"() <{level = 10 : i32, message = "bqd,bkd->bqk"}> : () -> ()
    %cst_89 = arith.constant dense<0.000000e+00> : vector<2x8x8xf32>
    %262 = tpu.matmul %260, %261, %cst_89 {dimension_numbers = #tpu.dot_dimension_numbers<[2], [2], [1], [1], [0, 0, 0, 1, 1, 1], [0], [0]>} : vector<2x8x8xf32>, vector<2x8x8xf32>, vector<2x8x8xf32> -> vector<2x8x8xf32>
    "tpu.trace_stop"() : () -> ()
    %263 = vector.broadcast %35 : vector<2x1x8xf32> to vector<2x8x8xf32>
    %264 = arith.addf %262, %263 : vector<2x8x8xf32>
    %cst_90 = arith.constant dense<0xFF800000> : vector<2x8xf32>
    %265 = vector.multi_reduction <maximumf>, %264, %cst_90 [2] : vector<2x8x8xf32> to vector<2x8xf32>
    %266 = vector.shape_cast %265 : vector<2x8xf32> to vector<2x8x1xf32>
    %267 = vector.broadcast %266 : vector<2x8x1xf32> to vector<2x8x8xf32>
    %268 = arith.subf %264, %267 : vector<2x8x8xf32>
    %269 = math.exp %268 : vector<2x8x8xf32>
    %cst_91 = arith.constant dense<0.000000e+00> : vector<2x8xf32>
    %270 = vector.multi_reduction <add>, %269, %cst_91 [2] : vector<2x8x8xf32> to vector<2x8xf32>
    %271 = vector.shape_cast %270 : vector<2x8xf32> to vector<2x8x1xf32>
    %272 = tpu.reciprocal %271 {approx = true} : vector<2x8x1xf32> -> vector<2x8x1xf32>
    %273 = vector.broadcast %272 : vector<2x8x1xf32> to vector<2x8x8xf32>
    %274 = arith.mulf %269, %273 : vector<2x8x8xf32>
    %275 = vector.extract_strided_slice %242 {offsets = [0, 0, 8], sizes = [2, 8, 8], strides = [1, 1, 1]} : vector<2x8x32xf32> to vector<2x8x8xf32>
    "tpu.trace_start"() <{level = 10 : i32, message = "bqk,bkd->bqd"}> : () -> ()
    %cst_92 = arith.constant dense<0.000000e+00> : vector<2x8x8xf32>
    %276 = tpu.matmul %274, %275, %cst_92 {dimension_numbers = #tpu.dot_dimension_numbers<[2], [1], [1], [2], [0, 0, 0, 1, 1, 2], [0], [0]>} : vector<2x8x8xf32>, vector<2x8x8xf32>, vector<2x8x8xf32> -> vector<2x8x8xf32>
    "tpu.trace_stop"() : () -> ()
    %277 = vector.extract_strided_slice %238 {offsets = [0, 0, 16], sizes = [2, 8, 8], strides = [1, 1, 1]} : vector<2x8x32xf32> to vector<2x8x8xf32>
    %278 = vector.extract_strided_slice %240 {offsets = [0, 0, 16], sizes = [2, 8, 8], strides = [1, 1, 1]} : vector<2x8x32xf32> to vector<2x8x8xf32>
    "tpu.trace_start"() <{level = 10 : i32, message = "bqd,bkd->bqk"}> : () -> ()
    %cst_93 = arith.constant dense<0.000000e+00> : vector<2x8x8xf32>
    %279 = tpu.matmul %277, %278, %cst_93 {dimension_numbers = #tpu.dot_dimension_numbers<[2], [2], [1], [1], [0, 0, 0, 1, 1, 1], [0], [0]>} : vector<2x8x8xf32>, vector<2x8x8xf32>, vector<2x8x8xf32> -> vector<2x8x8xf32>
    "tpu.trace_stop"() : () -> ()
    %280 = vector.broadcast %35 : vector<2x1x8xf32> to vector<2x8x8xf32>
    %281 = arith.addf %279, %280 : vector<2x8x8xf32>
    %cst_94 = arith.constant dense<0xFF800000> : vector<2x8xf32>
    %282 = vector.multi_reduction <maximumf>, %281, %cst_94 [2] : vector<2x8x8xf32> to vector<2x8xf32>
    %283 = vector.shape_cast %282 : vector<2x8xf32> to vector<2x8x1xf32>
    %284 = vector.broadcast %283 : vector<2x8x1xf32> to vector<2x8x8xf32>
    %285 = arith.subf %281, %284 : vector<2x8x8xf32>
    %286 = math.exp %285 : vector<2x8x8xf32>
    %cst_95 = arith.constant dense<0.000000e+00> : vector<2x8xf32>
    %287 = vector.multi_reduction <add>, %286, %cst_95 [2] : vector<2x8x8xf32> to vector<2x8xf32>
    %288 = vector.shape_cast %287 : vector<2x8xf32> to vector<2x8x1xf32>
    %289 = tpu.reciprocal %288 {approx = true} : vector<2x8x1xf32> -> vector<2x8x1xf32>
    %290 = vector.broadcast %289 : vector<2x8x1xf32> to vector<2x8x8xf32>
    %291 = arith.mulf %286, %290 : vector<2x8x8xf32>
    %292 = vector.extract_strided_slice %242 {offsets = [0, 0, 16], sizes = [2, 8, 8], strides = [1, 1, 1]} : vector<2x8x32xf32> to vector<2x8x8xf32>
    "tpu.trace_start"() <{level = 10 : i32, message = "bqk,bkd->bqd"}> : () -> ()
    %cst_96 = arith.constant dense<0.000000e+00> : vector<2x8x8xf32>
    %293 = tpu.matmul %291, %292, %cst_96 {dimension_numbers = #tpu.dot_dimension_numbers<[2], [1], [1], [2], [0, 0, 0, 1, 1, 2], [0], [0]>} : vector<2x8x8xf32>, vector<2x8x8xf32>, vector<2x8x8xf32> -> vector<2x8x8xf32>
    "tpu.trace_stop"() : () -> ()
    %294 = vector.extract_strided_slice %238 {offsets = [0, 0, 24], sizes = [2, 8, 8], strides = [1, 1, 1]} : vector<2x8x32xf32> to vector<2x8x8xf32>
    %295 = vector.extract_strided_slice %240 {offsets = [0, 0, 24], sizes = [2, 8, 8], strides = [1, 1, 1]} : vector<2x8x32xf32> to vector<2x8x8xf32>
    "tpu.trace_start"() <{level = 10 : i32, message = "bqd,bkd->bqk"}> : () -> ()
    %cst_97 = arith.constant dense<0.000000e+00> : vector<2x8x8xf32>
    %296 = tpu.matmul %294, %295, %cst_97 {dimension_numbers = #tpu.dot_dimension_numbers<[2], [2], [1], [1], [0, 0, 0, 1, 1, 1], [0], [0]>} : vector<2x8x8xf32>, vector<2x8x8xf32>, vector<2x8x8xf32> -> vector<2x8x8xf32>
    "tpu.trace_stop"() : () -> ()
    %297 = vector.broadcast %35 : vector<2x1x8xf32> to vector<2x8x8xf32>
    %298 = arith.addf %296, %297 : vector<2x8x8xf32>
    %cst_98 = arith.constant dense<0xFF800000> : vector<2x8xf32>
    %299 = vector.multi_reduction <maximumf>, %298, %cst_98 [2] : vector<2x8x8xf32> to vector<2x8xf32>
    %300 = vector.shape_cast %299 : vector<2x8xf32> to vector<2x8x1xf32>
    %301 = vector.broadcast %300 : vector<2x8x1xf32> to vector<2x8x8xf32>
    %302 = arith.subf %298, %301 : vector<2x8x8xf32>
    %303 = math.exp %302 : vector<2x8x8xf32>
    %cst_99 = arith.constant dense<0.000000e+00> : vector<2x8xf32>
    %304 = vector.multi_reduction <add>, %303, %cst_99 [2] : vector<2x8x8xf32> to vector<2x8xf32>
    %305 = vector.shape_cast %304 : vector<2x8xf32> to vector<2x8x1xf32>
    %306 = tpu.reciprocal %305 {approx = true} : vector<2x8x1xf32> -> vector<2x8x1xf32>
    %307 = vector.broadcast %306 : vector<2x8x1xf32> to vector<2x8x8xf32>
    %308 = arith.mulf %303, %307 : vector<2x8x8xf32>
    %309 = vector.extract_strided_slice %242 {offsets = [0, 0, 24], sizes = [2, 8, 8], strides = [1, 1, 1]} : vector<2x8x32xf32> to vector<2x8x8xf32>
    "tpu.trace_start"() <{level = 10 : i32, message = "bqk,bkd->bqd"}> : () -> ()
    %cst_100 = arith.constant dense<0.000000e+00> : vector<2x8x8xf32>
    %310 = tpu.matmul %308, %309, %cst_100 {dimension_numbers = #tpu.dot_dimension_numbers<[2], [1], [1], [2], [0, 0, 0, 1, 1, 2], [0], [0]>} : vector<2x8x8xf32>, vector<2x8x8xf32>, vector<2x8x8xf32> -> vector<2x8x8xf32>
    "tpu.trace_stop"() : () -> ()
    %311 = tpu.concatenate %259, %276, %293, %310 in 2 : vector<2x8x8xf32>, vector<2x8x8xf32>, vector<2x8x8xf32>, vector<2x8x8xf32> -> vector<2x8x32xf32>
    %312 = vector.shape_cast %311 : vector<2x8x32xf32> to vector<16x32xf32>
    %c1_101 = arith.constant 1 : index
    %c0_102 = arith.constant 0 : index
    %c0_103 = arith.constant 0 : index
    %313 = vector.load %arg6[%c1_101, %c0_102, %c0_103] : memref<2x32x32xf32, #tpu.memory_space<vmem>>, vector<1x32x32xf32>
    %314 = vector.shape_cast %313 : vector<1x32x32xf32> to vector<32x32xf32>
    %cst_104 = arith.constant dense<0.000000e+00> : vector<16x32xf32>
    %315 = tpu.matmul %312, %314, %cst_104 {dimension_numbers = #tpu.dot_dimension_numbers<[1], [0], [0], [1], [0, 0, 1, 1], [], []>} : vector<16x32xf32>, vector<32x32xf32>, vector<16x32xf32> -> vector<16x32xf32>
    %c1_105 = arith.constant 1 : index
    %c0_106 = arith.constant 0 : index
    %c0_107 = arith.constant 0 : index
    %316 = vector.load %arg7[%c1_105, %c0_106, %c0_107] : memref<2x1x32xf32, #tpu.memory_space<vmem>>, vector<1x1x32xf32>
    %317 = vector.shape_cast %316 : vector<1x1x32xf32> to vector<1x32xf32>
    %318 = vector.shape_cast %317 : vector<1x32xf32> to vector<32xf32>
    %319 = vector.shape_cast %318 : vector<32xf32> to vector<1x32xf32>
    %320 = vector.broadcast %319 : vector<1x32xf32> to vector<16x32xf32>
    %321 = arith.addf %315, %320 : vector<16x32xf32>
    %322 = arith.addf %223, %321 : vector<16x32xf32>
    %323 = vector.extract_strided_slice %225 {offsets = [0, 0], sizes = [1, 32], strides = [1, 1]} : vector<4x32xf32> to vector<1x32xf32>
    %324 = vector.shape_cast %323 : vector<1x32xf32> to vector<32xf32>
    %325 = vector.extract_strided_slice %225 {offsets = [1, 0], sizes = [1, 32], strides = [1, 1]} : vector<4x32xf32> to vector<1x32xf32>
    %326 = vector.shape_cast %325 : vector<1x32xf32> to vector<32xf32>
    %cst_108 = arith.constant dense<0.000000e+00> : vector<16xf32>
    %327 = vector.multi_reduction <add>, %322, %cst_108 [1] : vector<16x32xf32> to vector<16xf32>
    %328 = vector.shape_cast %327 : vector<16xf32> to vector<16x1xf32>
    %cst_109 = arith.constant 3.200000e+01 : f32
    %329 = vector.broadcast %cst_109 : f32 to vector<16x1xf32>
    %330 = arith.divf %328, %329 : vector<16x1xf32>
    %331 = vector.broadcast %330 : vector<16x1xf32> to vector<16x32xf32>
    %332 = arith.subf %322, %331 : vector<16x32xf32>
    %333 = arith.mulf %332, %332 : vector<16x32xf32>
    %cst_110 = arith.constant dense<0.000000e+00> : vector<16xf32>
    %334 = vector.multi_reduction <add>, %333, %cst_110 [1] : vector<16x32xf32> to vector<16xf32>
    %335 = vector.shape_cast %334 : vector<16xf32> to vector<16x1xf32>
    %cst_111 = arith.constant 3.200000e+01 : f32
    %336 = vector.broadcast %cst_111 : f32 to vector<16x1xf32>
    %337 = arith.divf %335, %336 : vector<16x1xf32>
    %338 = vector.broadcast %330 : vector<16x1xf32> to vector<16x32xf32>
    %339 = arith.subf %322, %338 : vector<16x32xf32>
    %cst_112 = arith.constant 9.99999974E-6 : f32
    %340 = vector.broadcast %cst_112 : f32 to vector<16x1xf32>
    %341 = arith.addf %337, %340 : vector<16x1xf32>
    %342 = math.rsqrt %341 : vector<16x1xf32>
    %343 = vector.broadcast %342 : vector<16x1xf32> to vector<16x32xf32>
    %344 = arith.mulf %339, %343 : vector<16x32xf32>
    %345 = vector.shape_cast %324 : vector<32xf32> to vector<1x32xf32>
    %346 = vector.broadcast %345 : vector<1x32xf32> to vector<16x32xf32>
    %347 = arith.mulf %344, %346 : vector<16x32xf32>
    %348 = vector.shape_cast %326 : vector<32xf32> to vector<1x32xf32>
    %349 = vector.broadcast %348 : vector<1x32xf32> to vector<16x32xf32>
    %350 = arith.addf %347, %349 : vector<16x32xf32>
    %c1_113 = arith.constant 1 : index
    %c0_114 = arith.constant 0 : index
    %c0_115 = arith.constant 0 : index
    %351 = vector.load %arg8[%c1_113, %c0_114, %c0_115] : memref<2x32x64xf32, #tpu.memory_space<vmem>>, vector<1x32x64xf32>
    %352 = vector.shape_cast %351 : vector<1x32x64xf32> to vector<32x64xf32>
    %cst_116 = arith.constant dense<0.000000e+00> : vector<16x64xf32>
    %353 = tpu.matmul %350, %352, %cst_116 {dimension_numbers = #tpu.dot_dimension_numbers<[1], [0], [0], [1], [0, 0, 1, 1], [], []>} : vector<16x32xf32>, vector<32x64xf32>, vector<16x64xf32> -> vector<16x64xf32>
    %c1_117 = arith.constant 1 : index
    %c0_118 = arith.constant 0 : index
    %c0_119 = arith.constant 0 : index
    %354 = vector.load %arg9[%c1_117, %c0_118, %c0_119] : memref<2x1x64xf32, #tpu.memory_space<vmem>>, vector<1x1x64xf32>
    %355 = vector.shape_cast %354 : vector<1x1x64xf32> to vector<1x64xf32>
    %356 = vector.shape_cast %355 : vector<1x64xf32> to vector<64xf32>
    %357 = vector.shape_cast %356 : vector<64xf32> to vector<1x64xf32>
    %358 = vector.broadcast %357 : vector<1x64xf32> to vector<16x64xf32>
    %359 = arith.addf %353, %358 : vector<16x64xf32>
    %cst_120 = arith.constant 5.000000e-01 : f32
    %360 = vector.broadcast %cst_120 : f32 to vector<16x64xf32>
    %361 = arith.mulf %360, %359 : vector<16x64xf32>
    %cst_121 = arith.constant 0.636619746 : f32
    %362 = math.sqrt %cst_121 : f32
    %cst_122 = arith.constant 4.471500e-02 : f32
    %363 = vector.broadcast %cst_122 : f32 to vector<16x64xf32>
    %364 = arith.mulf %363, %359 : vector<16x64xf32>
    %365 = arith.mulf %364, %359 : vector<16x64xf32>
    %366 = arith.mulf %365, %359 : vector<16x64xf32>
    %367 = arith.addf %359, %366 : vector<16x64xf32>
    %368 = vector.broadcast %362 : f32 to vector<16x64xf32>
    %369 = arith.mulf %368, %367 : vector<16x64xf32>
    %370 = math.tanh %369 : vector<16x64xf32>
    %cst_123 = arith.constant 1.000000e+00 : f32
    %371 = vector.broadcast %cst_123 : f32 to vector<16x64xf32>
    %372 = arith.addf %371, %370 : vector<16x64xf32>
    %373 = arith.mulf %361, %372 : vector<16x64xf32>
    %c1_124 = arith.constant 1 : index
    %c0_125 = arith.constant 0 : index
    %c0_126 = arith.constant 0 : index
    %374 = vector.load %arg10[%c1_124, %c0_125, %c0_126] : memref<2x64x32xf32, #tpu.memory_space<vmem>>, vector<1x64x32xf32>
    %375 = vector.shape_cast %374 : vector<1x64x32xf32> to vector<64x32xf32>
    %cst_127 = arith.constant dense<0.000000e+00> : vector<16x32xf32>
    %376 = tpu.matmul %373, %375, %cst_127 {dimension_numbers = #tpu.dot_dimension_numbers<[1], [0], [0], [1], [0, 0, 1, 1], [], []>} : vector<16x64xf32>, vector<64x32xf32>, vector<16x32xf32> -> vector<16x32xf32>
    %c1_128 = arith.constant 1 : index
    %c0_129 = arith.constant 0 : index
    %c0_130 = arith.constant 0 : index
    %377 = vector.load %arg11[%c1_128, %c0_129, %c0_130] : memref<2x1x32xf32, #tpu.memory_space<vmem>>, vector<1x1x32xf32>
    %378 = vector.shape_cast %377 : vector<1x1x32xf32> to vector<1x32xf32>
    %379 = vector.shape_cast %378 : vector<1x32xf32> to vector<32xf32>
    %380 = vector.shape_cast %379 : vector<32xf32> to vector<1x32xf32>
    %381 = vector.broadcast %380 : vector<1x32xf32> to vector<16x32xf32>
    %382 = arith.addf %376, %381 : vector<16x32xf32>
    %383 = arith.addf %350, %382 : vector<16x32xf32>
    %384 = vector.extract_strided_slice %225 {offsets = [2, 0], sizes = [1, 32], strides = [1, 1]} : vector<4x32xf32> to vector<1x32xf32>
    %385 = vector.shape_cast %384 : vector<1x32xf32> to vector<32xf32>
    %386 = vector.extract_strided_slice %225 {offsets = [3, 0], sizes = [1, 32], strides = [1, 1]} : vector<4x32xf32> to vector<1x32xf32>
    %387 = vector.shape_cast %386 : vector<1x32xf32> to vector<32xf32>
    %cst_131 = arith.constant dense<0.000000e+00> : vector<16xf32>
    %388 = vector.multi_reduction <add>, %383, %cst_131 [1] : vector<16x32xf32> to vector<16xf32>
    %389 = vector.shape_cast %388 : vector<16xf32> to vector<16x1xf32>
    %cst_132 = arith.constant 3.200000e+01 : f32
    %390 = vector.broadcast %cst_132 : f32 to vector<16x1xf32>
    %391 = arith.divf %389, %390 : vector<16x1xf32>
    %392 = vector.broadcast %391 : vector<16x1xf32> to vector<16x32xf32>
    %393 = arith.subf %383, %392 : vector<16x32xf32>
    %394 = arith.mulf %393, %393 : vector<16x32xf32>
    %cst_133 = arith.constant dense<0.000000e+00> : vector<16xf32>
    %395 = vector.multi_reduction <add>, %394, %cst_133 [1] : vector<16x32xf32> to vector<16xf32>
    %396 = vector.shape_cast %395 : vector<16xf32> to vector<16x1xf32>
    %cst_134 = arith.constant 3.200000e+01 : f32
    %397 = vector.broadcast %cst_134 : f32 to vector<16x1xf32>
    %398 = arith.divf %396, %397 : vector<16x1xf32>
    %399 = vector.broadcast %391 : vector<16x1xf32> to vector<16x32xf32>
    %400 = arith.subf %383, %399 : vector<16x32xf32>
    %cst_135 = arith.constant 9.99999974E-6 : f32
    %401 = vector.broadcast %cst_135 : f32 to vector<16x1xf32>
    %402 = arith.addf %398, %401 : vector<16x1xf32>
    %403 = math.rsqrt %402 : vector<16x1xf32>
    %404 = vector.broadcast %403 : vector<16x1xf32> to vector<16x32xf32>
    %405 = arith.mulf %400, %404 : vector<16x32xf32>
    %406 = vector.shape_cast %385 : vector<32xf32> to vector<1x32xf32>
    %407 = vector.broadcast %406 : vector<1x32xf32> to vector<16x32xf32>
    %408 = arith.mulf %405, %407 : vector<16x32xf32>
    %409 = vector.shape_cast %387 : vector<32xf32> to vector<1x32xf32>
    %410 = vector.broadcast %409 : vector<1x32xf32> to vector<16x32xf32>
    %411 = arith.addf %408, %410 : vector<16x32xf32>
    %412 = vector.shape_cast %411 : vector<16x32xf32> to vector<2x8x32xf32>
    %c0_136 = arith.constant 0 : index
    %c0_137 = arith.constant 0 : index
    %c0_138 = arith.constant 0 : index
    %413 = vector.load %arg13[%c0_136, %c0_137, %c0_138] : memref<2x8x32xf32, #tpu.memory_space<vmem>>, vector<2x8x32xf32>
    tpu.vector_store %arg13[%c0_136, %c0_137, %c0_138], %412 {strides = array<i32>} : memref<2x8x32xf32, #tpu.memory_space<vmem>>, vector<2x8x32xf32>,
    return
  }
}

</mosaic_0001>

<bundles_post_ra>
// kernel: bart_encoder.1
= control target key start
LH: loop header
LB: loop body
LE: loop exit
PB: predicated region body
PF: predicated region fallthrough
CT: control target
= control target key end

     0   :  { %18 = vsyncpa [#allocation3], 0  ;;  %s5256_s0 = inlined_call_operand.vmem [shape: f32[2,8,32], index: 0, kind: input, shape index: {}]   ;;  %s5257_s1 = inlined_call_operand.vmem [shape: f32[8,32], index: 1, kind: input, shape index: {}]   ;;  %s5258_s2 = inlined_call_operand.vmem [shape: f32[2,1,8], index: 2, kind: input, shape index: {}]   ;;  %s5259_s3 = inlined_call_operand.vmem [shape: f32[2,32], index: 3, kind: input, shape index: {}]   ;;  %s5260_s4 = inlined_call_operand.vmem [shape: f32[2,32,96], index: 4, kind: input, shape index: {}]   ;;  %s5261_s5 = inlined_call_operand.vmem [shape: f32[2,1,96], index: 5, kind: input, shape index: {}]   ;;  %s5262_s6 = inlined_call_operand.vmem [shape: f32[2,32,32], index: 6, kind: input, shape index: {}]   ;;  %s5263_s7 = inlined_call_operand.vmem [shape: f32[2,1,32], index: 7, kind: input, shape index: {}]   ;;  %s5264_s8 = inlined_call_operand.vmem [shape: f32[2,32,64], index: 8, kind: input, shape index: {}]   ;;  %s5265_s9 = inlined_call_operand.hbm [shape: f32[2,1,64], index: 9, kind: input, shape index: {}]   ;;  %s5266_s10 = inlined_call_operand.vmem [shape: f32[2,64,32], index: 10, kind: input, shape index: {}]   ;;  %s5267_s11 = inlined_call_operand.vmem [shape: f32[2,1,32], index: 11, kind: input, shape index: {}]   ;;  %s5268_s12 = inlined_call_operand.vmem [shape: f32[2,4,32], index: 12, kind: input, shape index: {}]   ;;  %s5269_s13 = inlined_call_operand.hbm [shape: f32[2,8,32], index: 13, kind: output, shape index: {}]  }
   0x1   :  { %19 = vsyncpa [#allocation4], 0  ;;  %s4521_s25 = smov [#allocation2]   ;;  %s4473_s29 = scalar_lea.hbm %s5265_s9, 32 }
   0x2   :  { %s43_s26 = sshll.u32 %s4521_s25, 4  ;;  %p4474_p0 = scmp.ne.s32.totalorder %s5265_s9, %s4473_s29  ;;  %s44_s26 = int_to_ptr.vmem [resolvable:$true] %s43_s26 }
   0x3   :  { %p4477_p1 = scmp.lt.u32.totalorder %s4473_s29, %s5265_s9 }
   0x5   :  { %p4479_p2 = pnand %p4477_p1, %p4474_p0 }
   0x7   :  { %4482 = shalt.err (!%p4479_p2)
}
   0x8   :  { %s4483_s17 = scalar_lea.vmem %s44_s26, 32  ;;  %p4488_p4 = scmp.lt.s32.totalorder %s44_s26, %s44_s26 }
   0x9   :  { %p4484_p3 = scmp.ne.s32.totalorder %s44_s26, %s4483_s17  ;;  %p4489_p5 = scmp.lt.s32.totalorder %s4483_s17, %s4483_s17 }
   0xb   :  { %p4490_p6 = por %p4489_p5, %p4488_p4 }
   0xd   :  { %p4491_p7 = pnand %p4490_p6, %p4484_p3 }
   0xf   :  { %4494 = shalt.err (!%p4491_p7)
}
  0x10   :  { %s5272_s18 = smov 16   ;;  %s4523_s19 = smov 1  }
  0x11   :  { %49 = dma.hbm_to_vmem [thread:$0]  %s5265_s9, 32, %s44_s26, [#allocation3], %s5272_s18, %s5272_s18, %s4523_s19  }
  0x12   :  { %4517 = dma.done.wait [#allocation3], 32  }
  0x13   :  { %4518 = vsyncadd [#allocation3], 4294967264  ;;  %v59_v0 = vld [vmem:[%s5256_s0] sm:$0xff]  ;;  %vm65_vm0 = vcmask 261120   ;;  %v60_v2 = vld [vmem:[%s5256_s0 + $0x8] sm:$0xff]  ;;  %v93_v25 = vlaneseq  ;;  %v4524_v44 = vmov 0.0  }
  0x14   :  { %v61_v1 = vld [vmem:[%s5257_s1] sm:$0xff]  ;;  %v109_v18 = vld [vmem:[%s5260_s4 + $0x8] sm:$0xff]  ;;  %v110_v19 = vld [vmem:[%s5260_s4 + $0x10] sm:$0xff]  ;;  %4036 = vmatprep.subr.mxu0 %v4524_v44  ;;  %vm4525_vm1 = vmmov 0   ;;  %s4526_s20 = smov 96   ;;  %vm217_vm2 = vcmask 64512  }
  0x15   :  { %v62_v3 = vadd.f32 %v61_v1, %v59_v0  ;;  %v63_v4 = vadd.f32 %v61_v1, %v60_v2  ;;  %v108_v17 = vld [vmem:[%s5260_s4] sm:$0xff]  ;;  %v111_v21 = vld [vmem:[%s5260_s4 + $0x18] sm:$0xff]  ;;  %v4650_v29 = vshrl.u32 %v93_v25, 7  ;;  %4038 = vmatprep.mubr.msk.f32.mxu0 %vm4525_vm1, %v4524_v44  ;;  %s4527_s25 = smov 64   ;;  %s4528_s27 = smov 88   ;;  %vm1564_vm3 = vcmask 195584  }
  0x16   :  { %v4279_v20 = vpack.c.bf16 %v109_v18, %v108_v17  ;;  %v4283_v22 = vpack.c.bf16 %v111_v21, %v110_v19  ;;  %v64_v32 = vld [vmem:[%s5259_s3] sm:$0x3]  ;;  %s4529_s28 = smov 120   ;;  %s4530_s0 = smov 56   ;;  %vm1561_vm4 = vcmask 130048   ;;  %vm1824_vm5 = vcmask 523264  }
  0x17   :  { %v66_v5 = vsel %vm65_vm0, %v62_v3, 0.0  ;;  %v69_v6 = vsel %vm65_vm0, %v63_v4, 0.0  ;;  %v4653_v31 = vsub.s32 0, %v4650_v29  ;;  %v4659_v33 = vsub.s32 1, %v4650_v29  ;;  %v3797_v45 = vld [vmem:[%s5261_s5] ss:$0 sm:$0xff] }
  0x18   :  { %67 = vadd.xlane.f32.xlu0 %v66_v5  ;;  %4280 = vmatprep.subr.bf16.mxu1 %v4279_v20  ;;  %v4709_v54 = vld [vmem:[%s5258_s2] ss:$0 sm:$0xff]  ;;  %v4715_v58 = vld [vmem:[%s5258_s2 + $0x1] ss:$0 sm:$0xff]  ;;  %s4531_s1 = smov 80   ;;  %s4532_s9 = smov 112  }
  0x19   :  { %4282 = vmatpush3.bf16.msra.mxu1 %v4279_v20  ;;  %v96_v34 = vrot.slane %v64_v32, %v4653_v31  ;;  %v102_v37 = vrot.slane %v64_v32, %v4659_v33  ;;  %s4533_s26 = smov 48   ;;  %s4534_s29 = smov 72  }
  0x1a   :  { %4284 = vmatprep.subr.bf16.mxu1 %v4283_v22  ;;  %s4535_s30 = smov 104   ;;  %s4536_s14 = smov 40  }
  0x1b   :  { %s5274_s15 = smov 8   ;;  %s5270_s16 = smov 24  }
  0x1c   :  { %70 = vadd.xlane.f32.xlu0 %v69_v6  ;;  %s5278_s19 = smov 24  }
  0x1d   :  { %4286 = vmatpush3.bf16.msra.mxu1 %v4283_v22 }
  0x1e   :  { %4026 = vmatprep.subr.mxu1 %v4524_v44 }
  0xa5   :  { %v68_v7 = vpop.xlane.xlu0 %67 }
  0xa6   :  { %v73_v8 = vmul.f32 0.03125, %v68_v7 }
  0xa8   :  { %v75_v9 = vsub.f32 %v62_v3, %v73_v8 }
  0xa9   :  { %v71_v10 = vpop.xlane.xlu0 %70 }
  0xaa   :  { %v74_v11 = vmul.f32 0.03125, %v71_v10  ;;  %v77_v12 = vmul.f32 %v75_v9, %v75_v9 }
  0xac   :  { %v76_v13 = vsub.f32 %v63_v4, %v74_v11  ;;  %v79_v14 = vsel %vm65_vm0, %v77_v12, 0.0 }
  0xad   :  { %80 = vadd.xlane.f32.xlu1 %v79_v14 }
  0xae   :  { %v78_v15 = vmul.f32 %v76_v13, %v76_v13 }
  0xb0   :  { %v82_v16 = vsel %vm65_vm0, %v78_v15, 0.0 }
  0xb1   :  { %83 = vadd.xlane.f32.xlu1 %v82_v16 }
 0x13a   :  { %v81_v23 = vpop.xlane.xlu1 %80 }
 0x13b   :  { %v85_v24 = vmul.f32 0.03125, %v81_v23 }
 0x13d   :  { %v87_v26 = vadd.f32 1e-05, %v85_v24 }
 0x13e   :  { %v84_v27 = vpop.xlane.xlu1 %83 }
 0x13f   :  { %4379 = vrsqrt.f32 %v87_v26  ;;  %v86_v28 = vmul.f32 0.03125, %v84_v27 }
 0x141   :  { %v88_v30 = vadd.f32 1e-05, %v86_v28 }
 0x143   :  { %4381 = vrsqrt.f32 %v88_v30 }
 0x149   :  { %v4380_v35 = vpop.eup %4379 }
 0x14a   :  { %v91_v36 = vmul.f32 %v4380_v35, %v75_v9 }
 0x14c   :  { %v97_v38 = vmul.f32 %v96_v34, %v91_v36 }
 0x14d   :  { %v4382_v39 = vpop.eup %4381 }
 0x14e   :  { %v92_v40 = vmul.f32 %v4382_v39, %v76_v13  ;;  %v4663_v41 = vadd.f32 %v102_v37, %v97_v38 }
 0x150   :  { %v98_v42 = vmul.f32 %v96_v34, %v92_v40  ;;  %4023 = vmatprep.mubr.msk.f32.mxu1 %vm65_vm0, %v4663_v41 }
 0x152   :  { %v4667_v43 = vadd.f32 %v102_v37, %v98_v42 }
 0x154   :  { %4024 = vmatmul.mubr.msk.f32.vlgmr.msra.gmra.mrb[0].mxu1 %vm65_vm0, %v4667_v43 }
 0x155   :  { %4028 = vmatprep.mubr.msk.f32.mxu1 %vm4525_vm1, %v4524_v44 }
 0x227   :  { %v4025_v46 = vpop.f32.mrb[0].mxu1 }
 0x228   :  { %v4680_v47 = vadd.f32 %v4025_v46, %v3797_v45  ;;  %v191_v48 = vpop.f32.mrb[1].mxu1 }
 0x229   :  { %v4682_v49 = vadd.f32 %v3797_v45, %v191_v48 }
 0x22a   :  { %294 = vrot.lane.b32.xlu1 %v4680_v47, %s4526_s20  ;;  %v4699_v53 = vmul.f32 0.35355338, %v4680_v47 }
 0x22b   :  { %215 = vrot.lane.b32.xlu0 %v4682_v49, %s4526_s20  ;;  %v4690_v51 = vmul.f32 0.35355338, %v4682_v49 }
 0x29c   :  { %v295_v52 = vpop.permute.xlu1 %294 }
 0x29d   :  { %v216_v50 = vpop.permute.xlu0 %215 }
 0x29e   :  { %4027 = vmatpush3.xpose.msk.msra.mxu1 %vm217_vm2, %v216_v50 }
 0x29f   :  { %4031 = vmatprep.subr.mxu1 %v4524_v44 }
 0x2a1   :  { %4029 = vmatmul.mubr.msk.f32.vlgmr.msra.gmra.mrb[2].mxu1 %vm217_vm2, %v4690_v51 }
 0x2a2   :  { %4032 = vmatpush3.xpose.msk.msra.mxu1 %vm217_vm2, %v295_v52  ;;  %4033 = vmatprep.mubr.msk.f32.mxu1 %vm4525_vm1, %v4524_v44 }
 0x2a3   :  { %4041 = vmatprep.subr.mxu1 %v4524_v44 }
 0x2a5   :  { %4034 = vmatmul.mubr.msk.f32.vlgmr.msra.gmra.mrb[4].mxu1 %vm217_vm2, %v4699_v53 }
 0x2a6   :  { %4043 = vmatprep.mubr.msk.f32.mxu1 %vm4525_vm1, %v4524_v44 }
 0x374   :  { %v289_v55 = vpop.f32.mrb[2].mxu1 }
 0x375   :  { %v290_v56 = vadd.f32 %v4709_v54, %v289_v55  ;;  %v4030_v57 = vpop.f32.mrb[3].mxu1 }
 0x377   :  { %v371_v59 = vsel %vm217_vm2, %v290_v56, -inf }
 0x378   :  { %372 = vmax.xlane.f32.xlu1 %v371_v59  ;;  %v367_v60 = vpop.f32.mrb[4].mxu1 }
 0x379   :  { %v368_v61 = vadd.f32 %v4715_v58, %v367_v60  ;;  %v4035_v62 = vpop.f32.mrb[5].mxu1 }
 0x37b   :  { %v374_v63 = vsel %vm217_vm2, %v368_v61, -inf }
 0x37c   :  { %375 = vmax.xlane.f32.xlu0 %v374_v63 }
 0x389   :  { %469 = vrot.lane.b32.xlu1 %v4680_v47, %s4527_s25 }
 0x38d   :  { %547 = vrot.lane.b32.xlu1 %v4682_v49, %s4528_s27 }
 0x391   :  { %625 = vrot.lane.b32.xlu1 %v4680_v47, %s4528_s27 }
 0x392   :  { %393 = vrot.lane.b32.xlu0 %v4682_v49, %s4527_s25 }
 0x405   :  { %v373_v0 = vpop.xlane.xlu1 %372 }
 0x406   :  { %v377_v1 = vsub.f32 %v290_v56, %v373_v0 }
 0x408   :  { %v379_v2 = vmul.f32 1.442695, %v377_v1 }
 0x409   :  { %v470_v3 = vpop.permute.xlu1 %469  ;;  %v376_v4 = vpop.xlane.xlu0 %375 }
 0x40a   :  { %4383 = vpow2.f32 %v379_v2  ;;  %v378_v5 = vsub.f32 %v368_v61, %v376_v4  ;;  %4042 = vmatpush3.msra.mxu1 %v470_v3 }
 0x40b   :  { %4051 = vmatprep.subr.mxu1 %v4524_v44 }
 0x40c   :  { %v381_v6 = vmul.f32 1.442695, %v378_v5 }
 0x40d   :  { %v394_v7 = vpop.permute.xlu0 %393  ;;  %v548_v12 = vpop.permute.xlu1 %547 }
 0x40e   :  { %4385 = vpow2.f32 %v381_v6  ;;  %4037 = vmatpush3.msra.mxu0 %v394_v7 }
 0x40f   :  { %4046 = vmatprep.subr.mxu0 %v4524_v44 }
 0x411   :  { %v626_v13 = vpop.permute.xlu1 %625 }
 0x414   :  { %v4384_v8 = vpop.eup %4383 }
 0x415   :  { %v383_v9 = vsel %vm217_vm2, %v4384_v8, 0.0 }
 0x416   :  { %384 = vadd.xlane.f32.xlu0 %v383_v9 }
 0x418   :  { %v4386_v10 = vpop.eup %4385 }
 0x419   :  { %v386_v11 = vsel %vm217_vm2, %v4386_v10, 0.0 }
 0x41a   :  { %387 = vadd.xlane.f32.xlu1 %v386_v11 }
 0x42b   :  { %623 = vrot.lane.b32.xlu1 %v4699_v53, %s4529_s28 }
 0x42c   :  { %545 = vrot.lane.b32.xlu0 %v4690_v51, %s4529_s28 }
 0x4a3   :  { %v385_v14 = vpop.xlane.xlu0 %384 }
 0x4a4   :  { %4387 = vrcp.f32 %v385_v14 }
 0x4a7   :  { %v388_v15 = vpop.xlane.xlu1 %387  ;;  %v546_v20 = vpop.permute.xlu0 %545 }
 0x4a8   :  { %4389 = vrcp.f32 %v388_v15 }
 0x4ab   :  { %v624_v21 = vpop.permute.xlu1 %623 }
 0x4ae   :  { %v4388_v16 = vpop.eup %4387 }
 0x4af   :  { %v391_v17 = vmul.f32 %v4388_v16, %v4384_v8 }
 0x4b1   :  { %4039 = vmatmul.mubr.msk.f32.vlgmr.msra.gmra.mrb[0].mxu0 %vm217_vm2, %v391_v17 }
 0x4b2   :  { %v4390_v18 = vpop.eup %4389  ;;  %4047 = vmatpush3.xpose.msk.msra.mxu0 %vm217_vm2, %v548_v12  ;;  %4048 = vmatprep.mubr.msk.f32.mxu0 %vm4525_vm1, %v4524_v44 }
 0x4b3   :  { %v392_v19 = vmul.f32 %v4390_v18, %v4386_v10  ;;  %4056 = vmatprep.subr.mxu0 %v4524_v44 }
 0x4b5   :  { %4044 = vmatmul.mubr.msk.f32.vlgmr.msra.gmra.mrb[6].mxu1 %vm217_vm2, %v392_v19  ;;  %4049 = vmatmul.mubr.msk.f32.vlgmr.msra.gmra.mrb[2].mxu0 %vm217_vm2, %v546_v20 }
 0x4b6   :  { %4052 = vmatpush3.xpose.msk.msra.mxu1 %vm217_vm2, %v626_v13  ;;  %4053 = vmatprep.mubr.msk.f32.mxu1 %vm4525_vm1, %v4524_v44 }
 0x4b7   :  { %4061 = vmatprep.subr.mxu1 %v4524_v44  ;;  %4058 = vmatprep.mubr.msk.f32.mxu0 %vm4525_vm1, %v4524_v44 }
 0x4b9   :  { %4054 = vmatmul.mubr.msk.f32.vlgmr.msra.gmra.mrb[8].mxu1 %vm217_vm2, %v624_v21 }
 0x4ba   :  { %4063 = vmatprep.mubr.msk.f32.mxu1 %vm4525_vm1, %v4524_v44 }
 0x584   :  { %v4752_v22 = vpop.f32.mrb[0].mxu0 }
 0x585   :  { %v4040_v23 = vpop.f32.mrb[1].mxu0 }
 0x588   :  { %v4754_v24 = vpop.f32.mrb[6].mxu1  ;;  %v619_v25 = vpop.f32.mrb[2].mxu0 }
 0x589   :  { %v620_v26 = vadd.f32 %v4709_v54, %v619_v25  ;;  %v4045_v27 = vpop.f32.mrb[7].mxu1  ;;  %v4050_v28 = vpop.f32.mrb[3].mxu0 }
 0x58b   :  { %v701_v30 = vsel %vm217_vm2, %v620_v26, -inf }
 0x58c   :  { %702 = vmax.xlane.f32.xlu0 %v701_v30  ;;  %v697_v32 = vpop.f32.mrb[8].mxu1 }
 0x58d   :  { %v698_v34 = vadd.f32 %v4715_v58, %v697_v32  ;;  %v4055_v35 = vpop.f32.mrb[9].mxu1 }
 0x58f   :  { %v704_v36 = vsel %vm217_vm2, %v698_v34, -inf }
 0x590   :  { %705 = vmax.xlane.f32.xlu1 %v704_v36 }
 0x5a1   :  { %799 = vrot.lane.b32.xlu1 %v4680_v47, %s4530_s0 }
 0x5a2   :  { %723 = vrot.lane.b32.xlu0 %v4682_v49, %s4530_s0 }
 0x5a5   :  { %877 = vrot.lane.b32.xlu1 %v4682_v49, %s4531_s1 }
 0x5a9   :  { %955 = vrot.lane.b32.xlu1 %v4680_v47, %s4531_s1 }
 0x5ad   :  { %953 = vrot.lane.b32.xlu1 %v4699_v53, %s4532_s9 }
 0x619   :  { %v703_v37 = vpop.xlane.xlu0 %702 }
 0x61a   :  { %v707_v38 = vsub.f32 %v620_v26, %v703_v37 }
 0x61c   :  { %v709_v39 = vmul.f32 1.442695, %v707_v38 }
 0x61d   :  { %v724_v40 = vpop.permute.xlu0 %723  ;;  %v706_v42 = vpop.xlane.xlu1 %705 }
 0x61e   :  { %4391 = vpow2.f32 %v709_v39  ;;  %v708_v45 = vsub.f32 %v698_v34, %v706_v42  ;;  %4057 = vmatpush3.msra.mxu0 %v724_v40 }
 0x61f   :  { %4066 = vmatprep.subr.mxu0 %v4524_v44 }
 0x620   :  { %v711_v46 = vmul.f32 1.442695, %v708_v45 }
 0x621   :  { %v800_v48 = vpop.permute.xlu1 %799 }
 0x622   :  { %4393 = vpow2.f32 %v711_v46  ;;  %4062 = vmatpush3.msra.mxu1 %v800_v48 }
 0x623   :  { %4071 = vmatprep.subr.mxu1 %v4524_v44 }
 0x625   :  { %v878_v60 = vpop.permute.xlu1 %877 }
 0x628   :  { %v4392_v50 = vpop.eup %4391 }
 0x629   :  { %v713_v52 = vsel %vm217_vm2, %v4392_v50, 0.0  ;;  %v956_v0 = vpop.permute.xlu1 %955 }
 0x62a   :  { %714 = vadd.xlane.f32.xlu0 %v713_v52 }
 0x62c   :  { %v4394_v55 = vpop.eup %4393 }
 0x62d   :  { %v716_v56 = vsel %vm217_vm2, %v4394_v55, 0.0  ;;  %v954_v3 = vpop.permute.xlu1 %953 }
 0x62e   :  { %717 = vadd.xlane.f32.xlu0 %v716_v56 }
 0x644   :  { %875 = vrot.lane.b32.xlu0 %v4690_v51, %s4532_s9 }
 0x6b7   :  { %v715_v57 = vpop.xlane.xlu0 %714 }
 0x6b8   :  { %4395 = vrcp.f32 %v715_v57 }
 0x6bb   :  { %v718_v59 = vpop.xlane.xlu0 %717 }
 0x6bc   :  { %4397 = vrcp.f32 %v718_v59 }
 0x6bf   :  { %v876_v2 = vpop.permute.xlu0 %875 }
 0x6c2   :  { %v4396_v61 = vpop.eup %4395 }
 0x6c3   :  { %v721_v62 = vmul.f32 %v4396_v61, %v4392_v50 }
 0x6c5   :  { %4059 = vmatmul.mubr.msk.f32.vlgmr.msra.gmra.mrb[4].mxu0 %vm217_vm2, %v721_v62 }
 0x6c6   :  { %v4398_v63 = vpop.eup %4397  ;;  %4067 = vmatpush3.xpose.msk.msra.mxu0 %vm217_vm2, %v878_v60  ;;  %4068 = vmatprep.mubr.msk.f32.mxu0 %vm4525_vm1, %v4524_v44 }
 0x6c7   :  { %v722_v1 = vmul.f32 %v4398_v63, %v4394_v55  ;;  %4076 = vmatprep.subr.mxu0 %v4524_v44 }
 0x6c9   :  { %4064 = vmatmul.mubr.msk.f32.vlgmr.msra.gmra.mrb[10].mxu1 %vm217_vm2, %v722_v1  ;;  %4069 = vmatmul.mubr.msk.f32.vlgmr.msra.gmra.mrb[6].mxu0 %vm217_vm2, %v876_v2 }
 0x6ca   :  { %4072 = vmatpush3.xpose.msk.msra.mxu1 %vm217_vm2, %v956_v0  ;;  %4073 = vmatprep.mubr.msk.f32.mxu1 %vm4525_vm1, %v4524_v44 }
 0x6cb   :  { %4081 = vmatprep.subr.mxu1 %v4524_v44  ;;  %4078 = vmatprep.mubr.msk.f32.mxu0 %vm4525_vm1, %v4524_v44 }
 0x6cd   :  { %4074 = vmatmul.mubr.msk.f32.vlgmr.msra.gmra.mrb[12].mxu1 %vm217_vm2, %v954_v3 }
 0x6ce   :  { %4083 = vmatprep.mubr.msk.f32.mxu1 %vm4525_vm1, %v4524_v44 }
 0x798   :  { %v4792_v4 = vpop.f32.mrb[4].mxu0 }
 0x799   :  { %v4060_v5 = vpop.f32.mrb[5].mxu0 }
 0x79c   :  { %v4794_v6 = vpop.f32.mrb[10].mxu1  ;;  %v949_v7 = vpop.f32.mrb[6].mxu0 }
 0x79d   :  { %v950_v8 = vadd.f32 %v4709_v54, %v949_v7  ;;  %v4065_v9 = vpop.f32.mrb[11].mxu1  ;;  %v4070_v10 = vpop.f32.mrb[7].mxu0 }
 0x79f   :  { %v1031_v11 = vsel %vm217_vm2, %v950_v8, -inf }
 0x7a0   :  { %1032 = vmax.xlane.f32.xlu0 %v1031_v11  ;;  %v1027_v12 = vpop.f32.mrb[12].mxu1 }
 0x7a1   :  { %v1028_v13 = vadd.f32 %v4715_v58, %v1027_v12  ;;  %v4075_v14 = vpop.f32.mrb[13].mxu1 }
 0x7a3   :  { %v1034_v15 = vsel %vm217_vm2, %v1028_v13, -inf }
 0x7a4   :  { %1035 = vmax.xlane.f32.xlu1 %v1034_v15  ;;  %v1568_v15 = vld [vmem:[%s5262_s6 + $0x8] sm:$0xff] }
 0x7b5   :  { %1129 = vrot.lane.b32.xlu1 %v4680_v47, %s4533_s26 }
 0x7b6   :  { %1053 = vrot.lane.b32.xlu0 %v4682_v49, %s4533_s26 }
 0x7b9   :  { %1207 = vrot.lane.b32.xlu1 %v4682_v49, %s4534_s29 }
 0x7bd   :  { %1285 = vrot.lane.b32.xlu1 %v4680_v47, %s4534_s29 }
 0x7c1   :  { %1283 = vrot.lane.b32.xlu1 %v4699_v53, %s4535_s30 }
 0x82d   :  { %v1033_v16 = vpop.xlane.xlu0 %1032 }
 0x82e   :  { %v1037_v17 = vsub.f32 %v950_v8, %v1033_v16 }
 0x830   :  { %v1039_v18 = vmul.f32 1.442695, %v1037_v17  ;;  %v1569_v17 = vld [vmem:[%s5262_s6 + $0x10] sm:$0xff] }
 0x831   :  { %v1054_v19 = vpop.permute.xlu0 %1053  ;;  %v1036_v20 = vpop.xlane.xlu1 %1035 }
 0x832   :  { %4399 = vpow2.f32 %v1039_v18  ;;  %v1038_v21 = vsub.f32 %v1028_v13, %v1036_v20  ;;  %4077 = vmatpush3.msra.mxu0 %v1054_v19  ;;  %v1570_v18 = vld [vmem:[%s5262_s6 + $0x18] sm:$0xff] }
 0x833   :  { %4086 = vmatprep.subr.mxu0 %v4524_v44  ;;  %v4291_v19 = vpack.c.bf16 %v1570_v18, %v1569_v17 }
 0x834   :  { %v1041_v23 = vmul.f32 1.442695, %v1038_v21 }
 0x835   :  { %v1130_v25 = vpop.permute.xlu1 %1129 }
 0x836   :  { %4401 = vpow2.f32 %v1041_v23  ;;  %4082 = vmatpush3.msra.mxu1 %v1130_v25 }
 0x837   :  { %4091 = vmatprep.subr.mxu1 %v4524_v44 }
 0x839   :  { %v1208_v34 = vpop.permute.xlu1 %1207 }
 0x83c   :  { %v4400_v26 = vpop.eup %4399 }
 0x83d   :  { %v1043_v27 = vsel %vm217_vm2, %v4400_v26, 0.0  ;;  %v1286_v38 = vpop.permute.xlu1 %1285 }
 0x83e   :  { %1044 = vadd.xlane.f32.xlu0 %v1043_v27 }
 0x840   :  { %v4402_v53 = vpop.eup %4401 }
 0x841   :  { %v1046_v28 = vsel %vm217_vm2, %v4402_v53, 0.0  ;;  %v1284_v40 = vpop.permute.xlu1 %1283 }
 0x842   :  { %1047 = vadd.xlane.f32.xlu0 %v1046_v28 }
 0x858   :  { %1205 = vrot.lane.b32.xlu0 %v4690_v51, %s4535_s30 }
 0x8cb   :  { %v1045_v30 = vpop.xlane.xlu0 %1044 }
 0x8cc   :  { %4403 = vrcp.f32 %v1045_v30 }
 0x8cf   :  { %v1048_v32 = vpop.xlane.xlu0 %1047 }
 0x8d0   :  { %4405 = vrcp.f32 %v1048_v32 }
 0x8d3   :  { %v1206_v51 = vpop.permute.xlu0 %1205 }
 0x8d6   :  { %v4404_v35 = vpop.eup %4403 }
 0x8d7   :  { %v1051_v36 = vmul.f32 %v4404_v35, %v4400_v26 }
 0x8d9   :  { %4079 = vmatmul.mubr.msk.f32.vlgmr.msra.gmra.mrb[8].mxu0 %vm217_vm2, %v1051_v36 }
 0x8da   :  { %v4406_v37 = vpop.eup %4405  ;;  %4087 = vmatpush3.xpose.msk.msra.mxu0 %vm217_vm2, %v1208_v34  ;;  %4088 = vmatprep.mubr.msk.f32.mxu0 %vm4525_vm1, %v4524_v44 }
 0x8db   :  { %v1052_v39 = vmul.f32 %v4406_v37, %v4402_v53  ;;  %4096 = vmatprep.subr.mxu0 %v4524_v44 }
 0x8dd   :  { %4084 = vmatmul.mubr.msk.f32.vlgmr.msra.gmra.mrb[14].mxu1 %vm217_vm2, %v1052_v39  ;;  %4089 = vmatmul.mubr.msk.f32.vlgmr.msra.gmra.mrb[10].mxu0 %vm217_vm2, %v1206_v51 }
 0x8de   :  { %4092 = vmatpush3.xpose.msk.msra.mxu1 %vm217_vm2, %v1286_v38  ;;  %4093 = vmatprep.mubr.msk.f32.mxu1 %vm4525_vm1, %v4524_v44 }
 0x8df   :  { %4101 = vmatprep.subr.mxu1 %v4524_v44  ;;  %4098 = vmatprep.mubr.msk.f32.mxu0 %vm4525_vm1, %v4524_v44 }
 0x8e1   :  { %4094 = vmatmul.mubr.msk.f32.vlgmr.msra.gmra.mrb[16].mxu1 %vm217_vm2, %v1284_v40 }
 0x8e2   :  { %4103 = vmatprep.mubr.msk.f32.mxu1 %vm4525_vm1, %v4524_v44 }
 0x9ac   :  { %v1125_v42 = vpop.f32.mrb[8].mxu0 }
 0x9ad   :  { %v4080_v45 = vpop.f32.mrb[9].mxu0 }
 0x9b0   :  { %v1201_v46 = vpop.f32.mrb[14].mxu1  ;;  %v1279_v48 = vpop.f32.mrb[10].mxu0 }
 0x9b1   :  { %v1280_v50 = vadd.f32 %v4709_v54, %v1279_v48  ;;  %v4085_v52 = vpop.f32.mrb[15].mxu1  ;;  %v4090_v55 = vpop.f32.mrb[11].mxu0 }
 0x9b3   :  { %v1361_v56 = vsel %vm217_vm2, %v1280_v50, -inf }
 0x9b4   :  { %1362 = vmax.xlane.f32.xlu0 %v1361_v56  ;;  %v1357_v57 = vpop.f32.mrb[16].mxu1 }
 0x9b5   :  { %v1358_v59 = vadd.f32 %v4715_v58, %v1357_v57  ;;  %v4095_v60 = vpop.f32.mrb[17].mxu1 }
 0x9b7   :  { %v1364_v61 = vsel %vm217_vm2, %v1358_v59, -inf }
 0x9b8   :  { %1365 = vmax.xlane.f32.xlu1 %v1364_v61 }
 0x9c9   :  { %1459 = vrot.lane.b32.xlu1 %v4680_v47, %s4536_s14 }
 0x9cd   :  { %1537 = vrot.lane.b32.xlu1 %v4792_v4, %s5274_s15 }
 0x9d1   :  { %1539 = vrot.lane.b32.xlu1 %v4794_v6, %s5274_s15 }
 0x9d5   :  { %1547 = vrot.lane.b32.xlu1 %v1201_v46, %s5272_s18 }
 0xa41   :  { %v1363_v62 = vpop.xlane.xlu0 %1362 }
 0xa42   :  { %v1367_v63 = vsub.f32 %v1280_v50, %v1363_v62 }
 0xa44   :  { %v1369_v0 = vmul.f32 1.442695, %v1367_v63 }
 0xa45   :  { %v1366_v1 = vpop.xlane.xlu1 %1365 }
 0xa46   :  { %4407 = vpow2.f32 %v1369_v0  ;;  %v1368_v2 = vsub.f32 %v1358_v59, %v1366_v1  ;;  %v1700_v0 = vld [vmem:[%s5264_s8 + $0x8] sm:$0xff] }
 0xa48   :  { %v1371_v3 = vmul.f32 1.442695, %v1368_v2  ;;  %v1701_v2 = vld [vmem:[%s5264_s8 + $0x10] sm:$0xff] }
 0xa49   :  { %v1460_v5 = vpop.permute.xlu1 %1459 }
 0xa4a   :  { %4409 = vpow2.f32 %v1371_v3  ;;  %4102 = vmatpush3.msra.mxu1 %v1460_v5  ;;  %v1702_v3 = vld [vmem:[%s5264_s8 + $0x18] sm:$0xff] }
 0xa4b   :  { %v4299_v5 = vpack.c.bf16 %v1702_v3, %v1701_v2 }
 0xa4d   :  { %v1538_v26 = vpop.permute.xlu1 %1537 }
 0xa4e   :  { %v1559_v28 = vsel %vm217_vm2, %v4752_v22, %v1538_v26  ;;  %v3826_v22 = vld [vmem:[%s5263_s7] ss:$0 sm:$0xff]  ;;  %v1812_v26 = vld [vmem:[%s5266_s10 + $0x18] sm:$0xff] }
 0xa50   :  { %v4408_v47 = vpop.eup %4407 }
 0xa51   :  { %v1373_v7 = vsel %vm217_vm2, %v4408_v47, 0.0  ;;  %v1540_v27 = vpop.permute.xlu1 %1539 }
 0xa52   :  { %1374 = vadd.xlane.f32.xlu0 %v1373_v7  ;;  %v1560_v36 = vsel %vm217_vm2, %v4754_v24, %v1540_v27 }
 0xa54   :  { %v4410_v4 = vpop.eup %4409 }
 0xa55   :  { %v1376_v8 = vsel %vm217_vm2, %v4410_v4, 0.0  ;;  %v1548_v30 = vpop.permute.xlu1 %1547 }
 0xa56   :  { %1377 = vadd.xlane.f32.xlu0 %v1376_v8  ;;  %v1563_v37 = vsel %vm1561_vm4, %v1560_v36, %v1548_v30  ;;  %v3829_v36 = vld [vmem:[#allocation2] ss:$0 sm:$0xff] }
 0xa6c   :  { %1383 = vrot.lane.b32.xlu0 %v4682_v49, %s4536_s14  ;;  %v1567_v49 = vld [vmem:[%s5262_s6] sm:$0xff] }
 0xa6d   :  { %v4287_v16 = vpack.c.bf16 %v1568_v15, %v1567_v49 }
 0xa70   :  { %1545 = vrot.lane.b32.xlu0 %v1125_v42, %s5272_s18 }
 0xadf   :  { %v1375_v6 = vpop.xlane.xlu0 %1374 }
 0xae0   :  { %4411 = vrcp.f32 %v1375_v6 }
 0xae3   :  { %v1378_v9 = vpop.xlane.xlu0 %1377 }
 0xae4   :  { %4413 = vrcp.f32 %v1378_v9 }
 0xae7   :  { %v1384_v10 = vpop.permute.xlu0 %1383 }
 0xae8   :  { %4097 = vmatpush3.msra.mxu0 %v1384_v10  ;;  %v4898_v10 = vld [vmem:[%s5268_s12] sm:$0xf] }
 0xae9   :  { %4288 = vmatprep.subr.bf16.mxu0 %v4287_v16 }
 0xaea   :  { %v4412_v11 = vpop.eup %4411 }
 0xaeb   :  { %v1381_v12 = vmul.f32 %v4412_v11, %v4408_v47  ;;  %v1546_v53 = vpop.permute.xlu0 %1545  ;;  %v1690_v11 = vrot.slane %v4898_v10, %v4653_v31 }
 0xaec   :  { %v1562_v32 = vsel %vm1561_vm4, %v1559_v28, %v1546_v53  ;;  %v1813_v53 = vld [vmem:[%s5266_s10 + $0x20] sm:$0xff]  ;;  %v1814_v28 = vld [vmem:[%s5266_s10 + $0x28] sm:$0xff] }
 0xaed   :  { %4099 = vmatmul.mubr.msk.f32.vlgmr.msra.gmra.mrb[12].mxu0 %vm217_vm2, %v1381_v12  ;;  %v4311_v30 = vpack.c.bf16 %v1814_v28, %v1813_v53 }
 0xaee   :  { %v4414_v13 = vpop.eup %4413  ;;  %4290 = vmatpush3.bf16.msra.mxu0 %v4287_v16 }
 0xaef   :  { %v1382_v14 = vmul.f32 %v4414_v13, %v4410_v4  ;;  %4292 = vmatprep.subr.bf16.mxu0 %v4291_v19 }
 0xaf1   :  { %4104 = vmatmul.mubr.msk.f32.vlgmr.msra.gmra.mrb[18].mxu1 %vm217_vm2, %v1382_v14  ;;  %v1696_v14 = vrot.slane %v4898_v10, %v4659_v33 }
 0xaf2   :  { %4294 = vmatpush3.bf16.msra.mxu0 %v4291_v19 }
 0xbc0   :  { %v1455_v20 = vpop.f32.mrb[12].mxu0 }
 0xbc1   :  { %1553 = vrot.lane.b32.xlu0 %v1455_v20, %s5270_s16  ;;  %v4100_v21 = vpop.f32.mrb[13].mxu0  ;;  %v1809_v20 = vld [vmem:[%s5266_s10] sm:$0xff] }
 0xbc2   :  { %v1810_v21 = vld [vmem:[%s5266_s10 + $0x8] sm:$0xff] }
 0xbc4   :  { %v1531_v23 = vpop.f32.mrb[18].mxu1 }
 0xbc5   :  { %1555 = vrot.lane.b32.xlu1 %v1531_v23, %s5270_s16  ;;  %v4105_v25 = vpop.f32.mrb[19].mxu1  ;;  %v4303_v23 = vpack.c.bf16 %v1810_v21, %v1809_v20  ;;  %v3838_v20 = vld [vmem:[%s5260_s4 + $0x30] sm:$0xff]  ;;  %v3839_v21 = vld [vmem:[%s5260_s4 + $0x38] sm:$0xff] }
 0xbc6   :  { %v1811_v25 = vld [vmem:[%s5266_s10 + $0x10] sm:$0xff] }
 0xbc7   :  { %v4307_v27 = vpack.c.bf16 %v1812_v26, %v1811_v25  ;;  %4304 = vmatprep.subr.bf16.mxu0 %v4303_v23 }
 0xc33   :  { %v1554_v34 = vpop.permute.xlu0 %1553 }
 0xc34   :  { %v1565_v35 = vsel %vm1564_vm3, %v1562_v32, %v1554_v34  ;;  %v1815_v32 = vld [vmem:[%s5266_s10 + $0x30] sm:$0xff]  ;;  %v1816_v34 = vld [vmem:[%s5266_s10 + $0x38] sm:$0xff] }
 0xc35   :  { %4114 = vmatprep.mubr.msk.f32.mxu0 %vm65_vm0, %v1565_v35  ;;  %v4315_v35 = vpack.c.bf16 %v1816_v34, %v1815_v32  ;;  %v1936_v32 = vsub.s32 2, %v4650_v29  ;;  %v1942_v34 = vsub.s32 3, %v4650_v29 }
 0xc37   :  { %v1556_v38 = vpop.permute.xlu1 %1555 }
 0xc38   :  { %v1566_v39 = vsel %vm1564_vm3, %v1563_v37, %v1556_v38 }
 0xc39   :  { %4115 = vmatmul.mubr.msk.f32.vlgmr.msra.gmra.mrb[14].mxu0 %vm65_vm0, %v1566_v39 }
 0xc3a   :  { %4306 = vmatpush3.bf16.msra.mxu0 %v4303_v23  ;;  %v4323_v23 = vpack.c.bf16 %v3839_v21, %v3838_v20 }
 0xc3b   :  { %4308 = vmatprep.subr.bf16.mxu0 %v4307_v27 }
 0xc3e   :  { %4310 = vmatpush3.bf16.msra.mxu0 %v4307_v27 }
 0xc3f   :  { %4312 = vmatprep.subr.bf16.mxu0 %v4311_v30 }
 0xc42   :  { %4314 = vmatpush3.bf16.msra.mxu0 %v4311_v30 }
 0xc43   :  { %4316 = vmatprep.subr.bf16.mxu0 %v4315_v35 }
 0xc46   :  { %4318 = vmatpush3.bf16.msra.mxu0 %v4315_v35  ;;  %v1937_v35 = vrot.slane %v4898_v10, %v1936_v32 }
 0xc47   :  { %4168 = vmatprep.subr.mxu0 %v4524_v44 }
 0xd0c   :  { %v4116_v51 = vpop.f32.mrb[14].mxu0 }
 0xd0d   :  { %v1656_v40 = vadd.f32 %v4116_v51, %v3826_v22  ;;  %v1650_v42 = vpop.f32.mrb[15].mxu0 }
 0xd0e   :  { %v1651_v45 = vadd.f32 %v3826_v22, %v1650_v42 }
 0xd0f   :  { %v1660_v46 = vadd.f32 %v1656_v40, %v4667_v43 }
 0xd10   :  { %v1659_v48 = vadd.f32 %v1651_v45, %v4663_v41  ;;  %v1699_v41 = vld [vmem:[%s5264_s8] sm:$0xff] }
 0xd11   :  { %v1664_v24 = vsel %vm65_vm0, %v1660_v46, 0.0  ;;  %v4295_v1 = vpack.c.bf16 %v1700_v0, %v1699_v41  ;;  %v3832_v41 = vld [vmem:[%s5267_s11] ss:$0 sm:$0xff] }
 0xd12   :  { %1665 = vadd.xlane.f32.xlu1 %v1664_v24  ;;  %v1661_v50 = vsel %vm65_vm0, %v1659_v48, 0.0 }
 0xd13   :  { %1662 = vadd.xlane.f32.xlu0 %v1661_v50  ;;  %4296 = vmatprep.subr.bf16.mxu1 %v4295_v1 }
 0xd14   :  { %4298 = vmatpush3.bf16.msra.mxu1 %v4295_v1 }
 0xd15   :  { %4300 = vmatprep.subr.bf16.mxu1 %v4299_v5 }
 0xd18   :  { %4302 = vmatpush3.bf16.msra.mxu1 %v4299_v5 }
 0xd9f   :  { %v1666_v52 = vpop.xlane.xlu1 %1665 }
 0xda0   :  { %v1668_v55 = vmul.f32 0.03125, %v1666_v52  ;;  %v1663_v56 = vpop.xlane.xlu0 %1662 }
 0xda1   :  { %v1667_v57 = vmul.f32 0.03125, %v1663_v56 }
 0xda2   :  { %v1670_v59 = vsub.f32 %v1660_v46, %v1668_v55 }
 0xda3   :  { %v1669_v60 = vsub.f32 %v1659_v48, %v1667_v57 }
 0xda4   :  { %v1672_v63 = vmul.f32 %v1670_v59, %v1670_v59 }
 0xda5   :  { %v1671_v61 = vmul.f32 %v1669_v60, %v1669_v60 }
 0xda6   :  { %v1676_v43 = vsel %vm65_vm0, %v1672_v63, 0.0 }
 0xda7   :  { %v1673_v62 = vsel %vm65_vm0, %v1671_v61, 0.0 }
 0xda8   :  { %1674 = vadd.xlane.f32.xlu0 %v1673_v62 }
 0xdac   :  { %1677 = vadd.xlane.f32.xlu0 %v1676_v43 }
 0xe35   :  { %v1675_v47 = vpop.xlane.xlu0 %1674 }
 0xe36   :  { %v1679_v7 = vmul.f32 0.03125, %v1675_v47 }
 0xe38   :  { %v1681_v4 = vadd.f32 1e-05, %v1679_v7 }
 0xe39   :  { %v1678_v8 = vpop.xlane.xlu0 %1677 }
 0xe3a   :  { %4415 = vrsqrt.f32 %v1681_v4  ;;  %v1680_v6 = vmul.f32 0.03125, %v1678_v8 }
 0xe3c   :  { %v1682_v9 = vadd.f32 1e-05, %v1680_v6 }
 0xe3e   :  { %4417 = vrsqrt.f32 %v1682_v9 }
 0xe44   :  { %v4416_v12 = vpop.eup %4415 }
 0xe45   :  { %v1685_v13 = vmul.f32 %v4416_v12, %v1669_v60 }
 0xe47   :  { %v1691_v49 = vmul.f32 %v1690_v11, %v1685_v13 }
 0xe48   :  { %v4418_v15 = vpop.eup %4417 }
 0xe49   :  { %v1686_v16 = vmul.f32 %v4418_v15, %v1670_v59  ;;  %v1697_v17 = vadd.f32 %v1696_v14, %v1691_v49 }
 0xe4b   :  { %v1692_v18 = vmul.f32 %v1690_v11, %v1686_v16  ;;  %4125 = vmatprep.mubr.msk.f32.mxu1 %vm65_vm0, %v1697_v17 }
 0xe4d   :  { %v1698_v19 = vadd.f32 %v1696_v14, %v1692_v18  ;;  %v3837_v18 = vld [vmem:[%s5260_s4 + $0x28] sm:$0xff] }
 0xe4f   :  { %4126 = vmatmul.mubr.msk.f32.vlgmr.msra.gmra.mrb[20].mxu1 %vm65_vm0, %v1698_v19 }
 0xf22   :  { %v4127_v37 = vpop.f32.mrb[20].mxu1 }
 0xf23   :  { %v1788_v38 = vadd.f32 %v4127_v37, %v3829_v36  ;;  %v1782_v39 = vpop.f32.mrb[21].mxu1 }
 0xf24   :  { %v1783_v22 = vadd.f32 %v3829_v36, %v1782_v39 }
 0xf25   :  { %v1794_v51 = vmul.f32 0.044715, %v1788_v38  ;;  %v1792_v62 = vmul.f32 0.5, %v1788_v38 }
 0xf26   :  { %v1793_v40 = vmul.f32 0.044715, %v1783_v22  ;;  %v1791_v60 = vmul.f32 0.5, %v1783_v22 }
 0xf27   :  { %v1796_v42 = vmul.f32 %v1794_v51, %v1788_v38 }
 0xf28   :  { %v1795_v45 = vmul.f32 %v1793_v40, %v1783_v22 }
 0xf29   :  { %v1798_v46 = vmul.f32 %v1796_v42, %v1788_v38 }
 0xf2a   :  { %v1797_v48 = vmul.f32 %v1795_v45, %v1783_v22 }
 0xf2b   :  { %v1800_v24 = vadd.f32 %v1798_v46, %v1788_v38  ;;  %v3841_v46 = vld [vmem:[%s5261_s5 + $0x1] ss:$0 sm:$0xff] }
 0xf2c   :  { %v1799_v50 = vadd.f32 %v1797_v48, %v1783_v22  ;;  %v1943_v22 = vrot.slane %v4898_v10, %v1942_v34 }
 0xf2d   :  { %v1802_v52 = vmul.f32 0.7978845, %v1800_v24 }
 0xf2e   :  { %v1801_v55 = vmul.f32 0.7978845, %v1799_v50 }
 0xf2f   :  { %4419 = vtanh.f32 %v1802_v52 }
 0xf30   :  { %4421 = vtanh.f32 %v1801_v55 }
 0xf39   :  { %v4420_v56 = vpop.eup %4419 }
 0xf3a   :  { %v4422_v57 = vpop.eup %4421  ;;  %v1806_v59 = vadd.f32 1.0, %v4420_v56 }
 0xf3b   :  { %v1805_v61 = vadd.f32 1.0, %v4422_v57 }
 0xf3c   :  { %v1808_v43 = vmul.f32 %v1806_v59, %v1792_v62 }
 0xf3d   :  { %v1807_v63 = vmul.f32 %v1805_v61, %v1791_v60 }
 0xf3f   :  { %4144 = vmatprep.mubr.msk.f32.mxu0 %vm1824_vm5, %v1807_v63 }
 0xf40   :  { %4145 = vmatmul.mubr.msk.f32.vlgmr.msra.gmra.mrb[16].mxu0 %vm1824_vm5, %v1808_v43 }
 0xf41   :  { %4170 = vmatprep.mubr.msk.f32.mxu0 %vm4525_vm1, %v4524_v44 }
0x1013   :  { %v4146_v0 = vpop.f32.mrb[16].mxu0 }
0x1014   :  { %v1903_v1 = vadd.f32 %v4146_v0, %v3832_v41  ;;  %v1897_v2 = vpop.f32.mrb[17].mxu0 }
0x1015   :  { %v1898_v3 = vadd.f32 %v3832_v41, %v1897_v2 }
0x1016   :  { %v1907_v5 = vadd.f32 %v1903_v1, %v1698_v19 }
0x1017   :  { %v1906_v47 = vadd.f32 %v1898_v3, %v1697_v17  ;;  %v3836_v17 = vld [vmem:[%s5260_s4 + $0x20] sm:$0xff] }
0x1018   :  { %v1911_v7 = vsel %vm65_vm0, %v1907_v5, 0.0  ;;  %v4319_v19 = vpack.c.bf16 %v3837_v18, %v3836_v17 }
0x1019   :  { %1912 = vadd.xlane.f32.xlu1 %v1911_v7  ;;  %v1908_v4 = vsel %vm65_vm0, %v1906_v47, 0.0 }
0x101a   :  { %1909 = vadd.xlane.f32.xlu0 %v1908_v4  ;;  %4320 = vmatprep.subr.bf16.mxu1 %v4319_v19 }
0x101b   :  { %4322 = vmatpush3.bf16.msra.mxu1 %v4319_v19 }
0x101c   :  { %4324 = vmatprep.subr.bf16.mxu1 %v4323_v23 }
0x101f   :  { %4326 = vmatpush3.bf16.msra.mxu1 %v4323_v23 }
0x1020   :  { %4158 = vmatprep.subr.mxu1 %v4524_v44 }
0x10a6   :  { %v1913_v8 = vpop.xlane.xlu1 %1912 }
0x10a7   :  { %v1915_v6 = vmul.f32 0.03125, %v1913_v8  ;;  %v1910_v9 = vpop.xlane.xlu0 %1909 }
0x10a8   :  { %v1914_v11 = vmul.f32 0.03125, %v1910_v9 }
0x10a9   :  { %v1917_v12 = vsub.f32 %v1907_v5, %v1915_v6 }
0x10aa   :  { %v1916_v13 = vsub.f32 %v1906_v47, %v1914_v11 }
0x10ab   :  { %v1919_v14 = vmul.f32 %v1917_v12, %v1917_v12 }
0x10ac   :  { %v1918_v49 = vmul.f32 %v1916_v13, %v1916_v13 }
0x10ad   :  { %v1923_v15 = vsel %vm65_vm0, %v1919_v14, 0.0 }
0x10ae   :  { %1924 = vadd.xlane.f32.xlu1 %v1923_v15  ;;  %v1920_v16 = vsel %vm65_vm0, %v1918_v49, 0.0 }
0x10af   :  { %1921 = vadd.xlane.f32.xlu0 %v1920_v16 }
0x113b   :  { %v1925_v25 = vpop.xlane.xlu1 %1924 }
0x113c   :  { %v1927_v26 = vmul.f32 0.03125, %v1925_v25  ;;  %v1922_v27 = vpop.xlane.xlu0 %1921 }
0x113d   :  { %v1926_v53 = vmul.f32 0.03125, %v1922_v27 }
0x113e   :  { %v1929_v28 = vadd.f32 1e-05, %v1927_v26  ;;  %v5045_v26 = vld [vmem:[%s5258_s2] ss:$0 sm:$0xff] }
0x113f   :  { %v1928_v30 = vadd.f32 1e-05, %v1926_v53 }
0x1140   :  { %4423 = vrsqrt.f32 %v1929_v28 }
0x1141   :  { %4425 = vrsqrt.f32 %v1928_v30 }
0x114a   :  { %v4424_v36 = vpop.eup %4423 }
0x114b   :  { %v4426_v37 = vpop.eup %4425  ;;  %v1933_v38 = vmul.f32 %v4424_v36, %v1917_v12  ;;  %v5052_v36 = vld [vmem:[%s5258_s2 + $0x1] ss:$0 sm:$0xff]  ;;  %s5276_s2 = smov 8  }
0x114c   :  { %v1932_v39 = vmul.f32 %v4426_v37, %v1916_v13 }
0x114d   :  { %v1939_v51 = vmul.f32 %v1937_v35, %v1933_v38 }
0x114e   :  { %v1938_v40 = vmul.f32 %v1937_v35, %v1932_v39 }
0x114f   :  { %v4965_v45 = vadd.f32 %v1943_v22, %v1939_v51 }
0x1150   :  { %v4963_v42 = vadd.f32 %v1943_v22, %v1938_v40 }
0x1152   :  { %4155 = vmatprep.mubr.msk.f32.mxu1 %vm65_vm0, %v4963_v42 }
0x1153   :  { %4156 = vmatmul.mubr.msk.f32.vlgmr.msra.gmra.mrb[22].mxu1 %vm65_vm0, %v4965_v45 }
0x1154   :  { %4160 = vmatprep.mubr.msk.f32.mxu1 %vm4525_vm1, %v4524_v44 }
0x1226   :  { %v4157_v10 = vpop.f32.mrb[22].mxu1 }
0x1227   :  { %v4976_v48 = vadd.f32 %v4157_v10, %v3841_v46  ;;  %v2033_v24 = vpop.f32.mrb[23].mxu1 }
0x1228   :  { %v4978_v50 = vadd.f32 %v3841_v46, %v2033_v24 }
0x1229   :  { %2123 = vrot.lane.b32.xlu1 %v4976_v48, %s4526_s20  ;;  %v4995_v57 = vmul.f32 0.35355338, %v4976_v48 }
0x122a   :  { %2045 = vrot.lane.b32.xlu0 %v4978_v50, %s4526_s20  ;;  %v4986_v55 = vmul.f32 0.35355338, %v4978_v50 }
0x129b   :  { %v2124_v56 = vpop.permute.xlu1 %2123 }
0x129c   :  { %v2046_v52 = vpop.permute.xlu0 %2045 }
0x129d   :  { %4159 = vmatpush3.xpose.msk.msra.mxu1 %vm217_vm2, %v2046_v52 }
0x129e   :  { %4163 = vmatprep.subr.mxu1 %v4524_v44 }
0x12a0   :  { %4161 = vmatmul.mubr.msk.f32.vlgmr.msra.gmra.mrb[24].mxu1 %vm217_vm2, %v4986_v55 }
0x12a1   :  { %4164 = vmatpush3.xpose.msk.msra.mxu1 %vm217_vm2, %v2124_v56  ;;  %4165 = vmatprep.mubr.msk.f32.mxu1 %vm4525_vm1, %v4524_v44 }
0x12a2   :  { %4173 = vmatprep.subr.mxu1 %v4524_v44 }
0x12a4   :  { %4166 = vmatmul.mubr.msk.f32.vlgmr.msra.gmra.mrb[26].mxu1 %vm217_vm2, %v4995_v57 }
0x12a5   :  { %4175 = vmatprep.mubr.msk.f32.mxu1 %vm4525_vm1, %v4524_v44 }
0x1373   :  { %v2118_v59 = vpop.f32.mrb[24].mxu1 }
0x1374   :  { %v2119_v60 = vadd.f32 %v4709_v54, %v2118_v59  ;;  %v4162_v61 = vpop.f32.mrb[25].mxu1 }
0x1376   :  { %v2200_v62 = vsel %vm217_vm2, %v2119_v60, -inf }
0x1377   :  { %2201 = vmax.xlane.f32.xlu1 %v2200_v62  ;;  %v2196_v63 = vpop.f32.mrb[26].mxu1 }
0x1378   :  { %v2197_v43 = vadd.f32 %v4715_v58, %v2196_v63  ;;  %v4167_v41 = vpop.f32.mrb[27].mxu1 }
0x137a   :  { %v2203_v0 = vsel %vm217_vm2, %v2197_v43, -inf }
0x137b   :  { %2204 = vmax.xlane.f32.xlu0 %v2203_v0 }
0x1388   :  { %2298 = vrot.lane.b32.xlu1 %v4976_v48, %s4527_s25 }
0x138c   :  { %2376 = vrot.lane.b32.xlu1 %v4978_v50, %s4528_s27 }
0x1390   :  { %2454 = vrot.lane.b32.xlu1 %v4976_v48, %s4528_s27 }
0x1391   :  { %2222 = vrot.lane.b32.xlu0 %v4978_v50, %s4527_s25 }
0x1404   :  { %v2202_v54 = vpop.xlane.xlu1 %2201 }
0x1405   :  { %v2206_v1 = vsub.f32 %v2119_v60, %v2202_v54 }
0x1407   :  { %v2208_v2 = vmul.f32 1.442695, %v2206_v1 }
0x1408   :  { %v2299_v58 = vpop.permute.xlu1 %2298  ;;  %v2205_v3 = vpop.xlane.xlu0 %2204 }
0x1409   :  { %4427 = vpow2.f32 %v2208_v2  ;;  %v2207_v5 = vsub.f32 %v2197_v43, %v2205_v3  ;;  %4174 = vmatpush3.msra.mxu1 %v2299_v58 }
0x140a   :  { %4183 = vmatprep.subr.mxu1 %v4524_v44 }
0x140b   :  { %v2210_v47 = vmul.f32 1.442695, %v2207_v5 }
0x140c   :  { %v2223_v7 = vpop.permute.xlu0 %2222  ;;  %v2377_v11 = vpop.permute.xlu1 %2376 }
0x140d   :  { %4429 = vpow2.f32 %v2210_v47  ;;  %4169 = vmatpush3.msra.mxu0 %v2223_v7 }
0x140e   :  { %4178 = vmatprep.subr.mxu0 %v4524_v44 }
0x1410   :  { %v2455_v12 = vpop.permute.xlu1 %2454 }
0x1413   :  { %v4428_v4 = vpop.eup %4427 }
0x1414   :  { %v2212_v8 = vsel %vm217_vm2, %v4428_v4, 0.0 }
0x1415   :  { %2213 = vadd.xlane.f32.xlu0 %v2212_v8 }
0x1417   :  { %v4430_v6 = vpop.eup %4429 }
0x1418   :  { %v2215_v9 = vsel %vm217_vm2, %v4430_v6, 0.0 }
0x1419   :  { %2216 = vadd.xlane.f32.xlu1 %v2215_v9 }
0x142a   :  { %2452 = vrot.lane.b32.xlu1 %v4995_v57, %s4529_s28 }
0x142b   :  { %2374 = vrot.lane.b32.xlu0 %v4986_v55, %s4529_s28  ;;  %s5277_s28 = smov 16  }
0x14a2   :  { %v2214_v13 = vpop.xlane.xlu0 %2213 }
0x14a3   :  { %4431 = vrcp.f32 %v2214_v13 }
0x14a6   :  { %v2217_v14 = vpop.xlane.xlu1 %2216  ;;  %v2375_v18 = vpop.permute.xlu0 %2374 }
0x14a7   :  { %4433 = vrcp.f32 %v2217_v14 }
0x14aa   :  { %v2453_v19 = vpop.permute.xlu1 %2452 }
0x14ad   :  { %v4432_v49 = vpop.eup %4431 }
0x14ae   :  { %v2220_v15 = vmul.f32 %v4432_v49, %v4428_v4 }
0x14b0   :  { %4171 = vmatmul.mubr.msk.f32.vlgmr.msra.gmra.mrb[18].mxu0 %vm217_vm2, %v2220_v15 }
0x14b1   :  { %v4434_v16 = vpop.eup %4433  ;;  %4179 = vmatpush3.xpose.msk.msra.mxu0 %vm217_vm2, %v2377_v11  ;;  %4180 = vmatprep.mubr.msk.f32.mxu0 %vm4525_vm1, %v4524_v44 }
0x14b2   :  { %v2221_v17 = vmul.f32 %v4434_v16, %v4430_v6  ;;  %4188 = vmatprep.subr.mxu0 %v4524_v44 }
0x14b4   :  { %4176 = vmatmul.mubr.msk.f32.vlgmr.msra.gmra.mrb[28].mxu1 %vm217_vm2, %v2221_v17  ;;  %4181 = vmatmul.mubr.msk.f32.vlgmr.msra.gmra.mrb[20].mxu0 %vm217_vm2, %v2375_v18 }
0x14b5   :  { %4184 = vmatpush3.xpose.msk.msra.mxu1 %vm217_vm2, %v2455_v12  ;;  %4185 = vmatprep.mubr.msk.f32.mxu1 %vm4525_vm1, %v4524_v44 }
0x14b6   :  { %4193 = vmatprep.subr.mxu1 %v4524_v44  ;;  %4190 = vmatprep.mubr.msk.f32.mxu0 %vm4525_vm1, %v4524_v44 }
0x14b8   :  { %4186 = vmatmul.mubr.msk.f32.vlgmr.msra.gmra.mrb[30].mxu1 %vm217_vm2, %v2453_v19 }
0x14b9   :  { %4195 = vmatprep.mubr.msk.f32.mxu1 %vm4525_vm1, %v4524_v44 }
0x1583   :  { %v5038_v20 = vpop.f32.mrb[18].mxu0 }
0x1584   :  { %v4172_v21 = vpop.f32.mrb[19].mxu0 }
0x1587   :  { %v5040_v23 = vpop.f32.mrb[28].mxu1  ;;  %v2448_v25 = vpop.f32.mrb[20].mxu0 }
0x1588   :  { %v2449_v27 = vadd.f32 %v5045_v26, %v2448_v25  ;;  %v4177_v53 = vpop.f32.mrb[29].mxu1  ;;  %v4182_v28 = vpop.f32.mrb[21].mxu0 }
0x158a   :  { %v2530_v30 = vsel %vm217_vm2, %v2449_v27, -inf }
0x158b   :  { %2531 = vmax.xlane.f32.xlu0 %v2530_v30  ;;  %v2526_v35 = vpop.f32.mrb[30].mxu1 }
0x158c   :  { %v2527_v37 = vadd.f32 %v5052_v36, %v2526_v35  ;;  %v4187_v38 = vpop.f32.mrb[31].mxu1 }
0x158e   :  { %v2533_v39 = vsel %vm217_vm2, %v2527_v37, -inf }
0x158f   :  { %2534 = vmax.xlane.f32.xlu1 %v2533_v39 }
0x15a0   :  { %2628 = vrot.lane.b32.xlu1 %v4976_v48, %s4530_s0 }
0x15a1   :  { %2552 = vrot.lane.b32.xlu0 %v4978_v50, %s4530_s0 }
0x15a4   :  { %2706 = vrot.lane.b32.xlu1 %v4978_v50, %s4531_s1 }
0x15a8   :  { %2784 = vrot.lane.b32.xlu1 %v4976_v48, %s4531_s1 }
0x15ac   :  { %2782 = vrot.lane.b32.xlu1 %v4995_v57, %s4532_s9 }
0x1618   :  { %v2532_v22 = vpop.xlane.xlu0 %2531 }
0x1619   :  { %v2536_v51 = vsub.f32 %v2449_v27, %v2532_v22 }
0x161b   :  { %v2538_v40 = vmul.f32 1.442695, %v2536_v51 }
0x161c   :  { %v2553_v46 = vpop.permute.xlu0 %2552  ;;  %v2535_v10 = vpop.xlane.xlu1 %2534 }
0x161d   :  { %4435 = vpow2.f32 %v2538_v40  ;;  %v2537_v24 = vsub.f32 %v2527_v37, %v2535_v10  ;;  %4189 = vmatpush3.msra.mxu0 %v2553_v46 }
0x161e   :  { %4198 = vmatprep.subr.mxu0 %v4524_v44 }
0x161f   :  { %v2540_v52 = vmul.f32 1.442695, %v2537_v24 }
0x1620   :  { %v2629_v56 = vpop.permute.xlu1 %2628 }
0x1621   :  { %4437 = vpow2.f32 %v2540_v52  ;;  %4194 = vmatpush3.msra.mxu1 %v2629_v56 }
0x1622   :  { %4203 = vmatprep.subr.mxu1 %v4524_v44 }
0x1624   :  { %v2707_v41 = vpop.permute.xlu1 %2706 }
0x1627   :  { %v4436_v59 = vpop.eup %4435 }
0x1628   :  { %v2542_v60 = vsel %vm217_vm2, %v4436_v59, 0.0  ;;  %v2785_v2 = vpop.permute.xlu1 %2784 }
0x1629   :  { %2543 = vadd.xlane.f32.xlu0 %v2542_v60 }
0x162b   :  { %v4438_v61 = vpop.eup %4437 }
0x162c   :  { %v2545_v62 = vsel %vm217_vm2, %v4438_v61, 0.0  ;;  %v2783_v5 = vpop.permute.xlu1 %2782 }
0x162d   :  { %2546 = vadd.xlane.f32.xlu0 %v2545_v62 }
0x1643   :  { %2704 = vrot.lane.b32.xlu0 %v4986_v55, %s4532_s9 }
0x16b6   :  { %v2544_v63 = vpop.xlane.xlu0 %2543 }
0x16b7   :  { %4439 = vrcp.f32 %v2544_v63 }
0x16ba   :  { %v2547_v43 = vpop.xlane.xlu0 %2546 }
0x16bb   :  { %4441 = vrcp.f32 %v2547_v43 }
0x16be   :  { %v2705_v3 = vpop.permute.xlu0 %2704 }
0x16c1   :  { %v4440_v0 = vpop.eup %4439 }
0x16c2   :  { %v2550_v54 = vmul.f32 %v4440_v0, %v4436_v59 }
0x16c4   :  { %4191 = vmatmul.mubr.msk.f32.vlgmr.msra.gmra.mrb[22].mxu0 %vm217_vm2, %v2550_v54 }
0x16c5   :  { %v4442_v1 = vpop.eup %4441  ;;  %4199 = vmatpush3.xpose.msk.msra.mxu0 %vm217_vm2, %v2707_v41  ;;  %4200 = vmatprep.mubr.msk.f32.mxu0 %vm4525_vm1, %v4524_v44 }
0x16c6   :  { %v2551_v58 = vmul.f32 %v4442_v1, %v4438_v61  ;;  %4208 = vmatprep.subr.mxu0 %v4524_v44 }
0x16c8   :  { %4196 = vmatmul.mubr.msk.f32.vlgmr.msra.gmra.mrb[32].mxu1 %vm217_vm2, %v2551_v58  ;;  %4201 = vmatmul.mubr.msk.f32.vlgmr.msra.gmra.mrb[24].mxu0 %vm217_vm2, %v2705_v3 }
0x16c9   :  { %4204 = vmatpush3.xpose.msk.msra.mxu1 %vm217_vm2, %v2785_v2  ;;  %4205 = vmatprep.mubr.msk.f32.mxu1 %vm4525_vm1, %v4524_v44 }
0x16ca   :  { %4213 = vmatprep.subr.mxu1 %v4524_v44  ;;  %4210 = vmatprep.mubr.msk.f32.mxu0 %vm4525_vm1, %v4524_v44 }
0x16cc   :  { %4206 = vmatmul.mubr.msk.f32.vlgmr.msra.gmra.mrb[34].mxu1 %vm217_vm2, %v2783_v5 }
0x16cd   :  { %4215 = vmatprep.mubr.msk.f32.mxu1 %vm4525_vm1, %v4524_v44 }
0x1797   :  { %v5088_v47 = vpop.f32.mrb[22].mxu0 }
0x1798   :  { %v4192_v7 = vpop.f32.mrb[23].mxu0 }
0x179b   :  { %v5090_v4 = vpop.f32.mrb[32].mxu1  ;;  %v2778_v8 = vpop.f32.mrb[24].mxu0 }
0x179c   :  { %v2779_v6 = vadd.f32 %v5045_v26, %v2778_v8  ;;  %v4197_v9 = vpop.f32.mrb[33].mxu1  ;;  %v4202_v11 = vpop.f32.mrb[25].mxu0 }
0x179e   :  { %v2860_v12 = vsel %vm217_vm2, %v2779_v6, -inf }
0x179f   :  { %2861 = vmax.xlane.f32.xlu0 %v2860_v12  ;;  %v2856_v13 = vpop.f32.mrb[34].mxu1 }
0x17a0   :  { %v2857_v14 = vadd.f32 %v5052_v36, %v2856_v13  ;;  %v4207_v49 = vpop.f32.mrb[35].mxu1 }
0x17a1   :  { %v3869_v49 = vld [vmem:[%s5262_s6 + $0x28] sm:$0xff] }
0x17a2   :  { %v2863_v15 = vsel %vm217_vm2, %v2857_v14, -inf }
0x17a3   :  { %2864 = vmax.xlane.f32.xlu1 %v2863_v15 }
0x17b4   :  { %2958 = vrot.lane.b32.xlu1 %v4976_v48, %s4533_s26 }
0x17b5   :  { %2882 = vrot.lane.b32.xlu0 %v4978_v50, %s4533_s26 }
0x17b8   :  { %3036 = vrot.lane.b32.xlu1 %v4978_v50, %s4534_s29 }
0x17bc   :  { %3114 = vrot.lane.b32.xlu1 %v4976_v48, %s4534_s29 }
0x17c0   :  { %3112 = vrot.lane.b32.xlu1 %v4995_v57, %s4535_s30 }
0x182c   :  { %v2862_v16 = vpop.xlane.xlu0 %2861 }
0x182d   :  { %v2866_v17 = vsub.f32 %v2779_v6, %v2862_v16  ;;  %v3870_v16 = vld [vmem:[%s5262_s6 + $0x30] sm:$0xff] }
0x182f   :  { %v2868_v18 = vmul.f32 1.442695, %v2866_v17  ;;  %v3871_v17 = vld [vmem:[%s5262_s6 + $0x38] sm:$0xff] }
0x1830   :  { %v2883_v19 = vpop.permute.xlu0 %2882  ;;  %v2865_v21 = vpop.xlane.xlu1 %2864 }
0x1831   :  { %4443 = vpow2.f32 %v2868_v18  ;;  %v2867_v25 = vsub.f32 %v2857_v14, %v2865_v21  ;;  %4209 = vmatpush3.msra.mxu0 %v2883_v19  ;;  %v4331_v18 = vpack.c.bf16 %v3871_v17, %v3870_v16 }
0x1832   :  { %4218 = vmatprep.subr.mxu0 %v4524_v44 }
0x1833   :  { %v2870_v27 = vmul.f32 1.442695, %v2867_v25 }
0x1834   :  { %v2959_v53 = vpop.permute.xlu1 %2958 }
0x1835   :  { %4445 = vpow2.f32 %v2870_v27  ;;  %4214 = vmatpush3.msra.mxu1 %v2959_v53 }
0x1836   :  { %4223 = vmatprep.subr.mxu1 %v4524_v44 }
0x1838   :  { %v3037_v39 = vpop.permute.xlu1 %3036 }
0x183b   :  { %v4444_v28 = vpop.eup %4443 }
0x183c   :  { %v2872_v30 = vsel %vm217_vm2, %v4444_v28, 0.0  ;;  %v3115_v46 = vpop.permute.xlu1 %3114 }
0x183d   :  { %2873 = vadd.xlane.f32.xlu0 %v2872_v30 }
0x183f   :  { %v4446_v57 = vpop.eup %4445 }
0x1840   :  { %v2875_v35 = vsel %vm217_vm2, %v4446_v57, 0.0  ;;  %v3113_v24 = vpop.permute.xlu1 %3112 }
0x1841   :  { %2876 = vadd.xlane.f32.xlu0 %v2875_v35 }
0x1857   :  { %3034 = vrot.lane.b32.xlu0 %v4986_v55, %s4535_s30 }
0x18ca   :  { %v2874_v37 = vpop.xlane.xlu0 %2873 }
0x18cb   :  { %4447 = vrcp.f32 %v2874_v37 }
0x18ce   :  { %v2877_v38 = vpop.xlane.xlu0 %2876 }
0x18cf   :  { %4449 = vrcp.f32 %v2877_v38 }
0x18d2   :  { %v3035_v55 = vpop.permute.xlu0 %3034 }
0x18d5   :  { %v4448_v22 = vpop.eup %4447 }
0x18d6   :  { %v2880_v51 = vmul.f32 %v4448_v22, %v4444_v28 }
0x18d8   :  { %4211 = vmatmul.mubr.msk.f32.vlgmr.msra.gmra.mrb[26].mxu0 %vm217_vm2, %v2880_v51 }
0x18d9   :  { %v4450_v40 = vpop.eup %4449  ;;  %4219 = vmatpush3.xpose.msk.msra.mxu0 %vm217_vm2, %v3037_v39  ;;  %4220 = vmatprep.mubr.msk.f32.mxu0 %vm4525_vm1, %v4524_v44 }
0x18da   :  { %v2881_v10 = vmul.f32 %v4450_v40, %v4446_v57  ;;  %4228 = vmatprep.subr.mxu0 %v4524_v44 }
0x18dc   :  { %4216 = vmatmul.mubr.msk.f32.vlgmr.msra.gmra.mrb[36].mxu1 %vm217_vm2, %v2881_v10  ;;  %4221 = vmatmul.mubr.msk.f32.vlgmr.msra.gmra.mrb[28].mxu0 %vm217_vm2, %v3035_v55 }
0x18dd   :  { %4224 = vmatpush3.xpose.msk.msra.mxu1 %vm217_vm2, %v3115_v46  ;;  %4225 = vmatprep.mubr.msk.f32.mxu1 %vm4525_vm1, %v4524_v44 }
0x18de   :  { %4233 = vmatprep.subr.mxu1 %v4524_v44  ;;  %4230 = vmatprep.mubr.msk.f32.mxu0 %vm4525_vm1, %v4524_v44 }
0x18e0   :  { %4226 = vmatmul.mubr.msk.f32.vlgmr.msra.gmra.mrb[38].mxu1 %vm217_vm2, %v3113_v24 }
0x18e1   :  { %4235 = vmatprep.mubr.msk.f32.mxu1 %vm4525_vm1, %v4524_v44 }
0x19ab   :  { %v2954_v52 = vpop.f32.mrb[26].mxu0 }
0x19ac   :  { %v4212_v56 = vpop.f32.mrb[27].mxu0 }
0x19af   :  { %v3030_v59 = vpop.f32.mrb[36].mxu1  ;;  %v3108_v60 = vpop.f32.mrb[28].mxu0 }
0x19b0   :  { %v3109_v61 = vadd.f32 %v5045_v26, %v3108_v60  ;;  %v4217_v62 = vpop.f32.mrb[37].mxu1  ;;  %v4222_v63 = vpop.f32.mrb[29].mxu0 }
0x19b2   :  { %v3190_v43 = vsel %vm217_vm2, %v3109_v61, -inf }
0x19b3   :  { %3191 = vmax.xlane.f32.xlu0 %v3190_v43  ;;  %v3186_v41 = vpop.f32.mrb[38].mxu1 }
0x19b4   :  { %v3187_v0 = vadd.f32 %v5052_v36, %v3186_v41  ;;  %v4227_v54 = vpop.f32.mrb[39].mxu1 }
0x19b6   :  { %v3193_v1 = vsel %vm217_vm2, %v3187_v0, -inf }
0x19b7   :  { %3194 = vmax.xlane.f32.xlu1 %v3193_v1 }
0x19c8   :  { %3288 = vrot.lane.b32.xlu1 %v4976_v48, %s4536_s14 }
0x19cc   :  { %3366 = vrot.lane.b32.xlu1 %v5088_v47, %s5276_s2 }
0x19d0   :  { %3368 = vrot.lane.b32.xlu1 %v5090_v4, %s5276_s2 }
0x19d4   :  { %3376 = vrot.lane.b32.xlu1 %v3030_v59, %s5277_s28 }
0x1a40   :  { %v3192_v44 = vpop.xlane.xlu0 %3191 }
0x1a41   :  { %v3196_v26 = vsub.f32 %v3109_v61, %v3192_v44 }
0x1a43   :  { %v3198_v2 = vmul.f32 1.442695, %v3196_v26  ;;  %v3877_v26 = vld [vmem:[%s5264_s8 + $0x28] sm:$0xff] }
0x1a44   :  { %v3195_v58 = vpop.xlane.xlu1 %3194 }
0x1a45   :  { %4451 = vpow2.f32 %v3198_v2  ;;  %v3197_v36 = vsub.f32 %v3187_v0, %v3195_v58  ;;  %v3878_v58 = vld [vmem:[%s5264_s8 + $0x30] sm:$0xff] }
0x1a47   :  { %v3200_v3 = vmul.f32 1.442695, %v3197_v36  ;;  %v3879_v36 = vld [vmem:[%s5264_s8 + $0x38] sm:$0xff] }
0x1a48   :  { %v3289_v5 = vpop.permute.xlu1 %3288 }
0x1a49   :  { %4453 = vpow2.f32 %v3200_v3  ;;  %4234 = vmatpush3.msra.mxu1 %v3289_v5  ;;  %v4339_v3 = vpack.c.bf16 %v3879_v36, %v3878_v58 }
0x1a4c   :  { %v3367_v53 = vpop.permute.xlu1 %3366 }
0x1a4d   :  { %v3388_v57 = vsel %vm217_vm2, %v5038_v20, %v3367_v53  ;;  %v3873_v20 = vld [vmem:[%s5263_s7 + $0x1] ss:$0 sm:$0xff]  ;;  %v3888_v53 = vld [vmem:[%s5266_s10 + $0x68] sm:$0xff] }
0x1a4f   :  { %v4452_v7 = vpop.eup %4451 }
0x1a50   :  { %v3202_v48 = vsel %vm217_vm2, %v4452_v7, 0.0  ;;  %v3369_v28 = vpop.permute.xlu1 %3368 }
0x1a51   :  { %3203 = vadd.xlane.f32.xlu0 %v3202_v48  ;;  %v3389_v22 = vsel %vm217_vm2, %v5040_v23, %v3369_v28 }
0x1a53   :  { %v4454_v47 = vpop.eup %4453 }
0x1a54   :  { %v3205_v8 = vsel %vm217_vm2, %v4454_v47, 0.0  ;;  %v3377_v35 = vpop.permute.xlu1 %3376 }
0x1a55   :  { %3206 = vadd.xlane.f32.xlu0 %v3205_v8  ;;  %v3391_v51 = vsel %vm1561_vm4, %v3389_v22, %v3377_v35 }
0x1a6b   :  { %3212 = vrot.lane.b32.xlu0 %v4978_v50, %s4536_s14  ;;  %v3868_v50 = vld [vmem:[%s5262_s6 + $0x20] sm:$0xff] }
0x1a6c   :  { %v4327_v15 = vpack.c.bf16 %v3869_v49, %v3868_v50 }
0x1a6f   :  { %3374 = vrot.lane.b32.xlu0 %v2954_v52, %s5277_s28 }
0x1ade   :  { %v3204_v4 = vpop.xlane.xlu0 %3203 }
0x1adf   :  { %4455 = vrcp.f32 %v3204_v4 }
0x1ae2   :  { %v3207_v6 = vpop.xlane.xlu0 %3206 }
0x1ae3   :  { %4457 = vrcp.f32 %v3207_v6  ;;  %v5194_v6 = vld [vmem:[%s5268_s12 + $0x4] sm:$0xf] }
0x1ae6   :  { %v3213_v9 = vpop.permute.xlu0 %3212 }
0x1ae7   :  { %4229 = vmatpush3.msra.mxu0 %v3213_v9  ;;  %v3519_v9 = vrot.slane %v5194_v6, %v4653_v31  ;;  %v3884_v31 = vld [vmem:[%s5266_s10 + $0x48] sm:$0xff] }
0x1ae8   :  { %4328 = vmatprep.subr.bf16.mxu0 %v4327_v15 }
0x1ae9   :  { %v4456_v11 = vpop.eup %4455 }
0x1aea   :  { %v3210_v12 = vmul.f32 %v4456_v11, %v4452_v7  ;;  %v3375_v30 = vpop.permute.xlu0 %3374 }
0x1aeb   :  { %v3390_v37 = vsel %vm1561_vm4, %v3388_v57, %v3375_v30  ;;  %v3889_v30 = vld [vmem:[%s5266_s10 + $0x70] sm:$0xff]  ;;  %v3890_v57 = vld [vmem:[%s5266_s10 + $0x78] sm:$0xff] }
0x1aec   :  { %4231 = vmatmul.mubr.msk.f32.vlgmr.msra.gmra.mrb[30].mxu0 %vm217_vm2, %v3210_v12  ;;  %v4355_v35 = vpack.c.bf16 %v3890_v57, %v3889_v30 }
0x1aed   :  { %v4458_v13 = vpop.eup %4457  ;;  %4330 = vmatpush3.bf16.msra.mxu0 %v4327_v15 }
0x1aee   :  { %v3211_v14 = vmul.f32 %v4458_v13, %v4454_v47  ;;  %4332 = vmatprep.subr.bf16.mxu0 %v4331_v18  ;;  %v3525_v13 = vrot.slane %v5194_v6, %v4659_v33  ;;  %v3885_v33 = vld [vmem:[%s5266_s10 + $0x50] sm:$0xff] }
0x1af0   :  { %4236 = vmatmul.mubr.msk.f32.vlgmr.msra.gmra.mrb[40].mxu1 %vm217_vm2, %v3211_v14 }
0x1af1   :  { %4334 = vmatpush3.bf16.msra.mxu0 %v4331_v18  ;;  %v3883_v18 = vld [vmem:[%s5266_s10 + $0x40] sm:$0xff] }
0x1bbf   :  { %v3284_v19 = vpop.f32.mrb[30].mxu0 }
0x1bc0   :  { %3382 = vrot.lane.b32.xlu0 %v3284_v19, %s5278_s19  ;;  %v4232_v21 = vpop.f32.mrb[31].mxu0  ;;  %v4343_v19 = vpack.c.bf16 %v3884_v31, %v3883_v18  ;;  %v3769_v18 = vrot.slane %v5194_v6, %v1936_v32 }
0x1bc1   :  { %v3886_v21 = vld [vmem:[%s5266_s10 + $0x58] sm:$0xff] }
0x1bc2   :  { %4344 = vmatprep.subr.bf16.mxu0 %v4343_v19 }
0x1bc3   :  { %v3360_v25 = vpop.f32.mrb[40].mxu1 }
0x1bc4   :  { %3384 = vrot.lane.b32.xlu1 %v3360_v25, %s5278_s19  ;;  %v4237_v27 = vpop.f32.mrb[41].mxu1  ;;  %v4347_v25 = vpack.c.bf16 %v3886_v21, %v3885_v33  ;;  %v3775_v33 = vrot.slane %v5194_v6, %v1942_v34 }
0x1bc5   :  { %v3887_v27 = vld [vmem:[%s5266_s10 + $0x60] sm:$0xff] }
0x1bc6   :  { %v4351_v28 = vpack.c.bf16 %v3888_v53, %v3887_v27 }
0x1c32   :  { %v3383_v38 = vpop.permute.xlu0 %3382 }
0x1c33   :  { %v3392_v39 = vsel %vm1564_vm3, %v3390_v37, %v3383_v38  ;;  %v3880_v37 = vld [vmem:[#allocation2 + $0x1] ss:$0 sm:$0xff] }
0x1c34   :  { %4246 = vmatprep.mubr.msk.f32.mxu0 %vm65_vm0, %v3392_v39 }
0x1c36   :  { %v3385_v40 = vpop.permute.xlu1 %3384 }
0x1c37   :  { %v3393_v46 = vsel %vm1564_vm3, %v3391_v51, %v3385_v40 }
0x1c38   :  { %4247 = vmatmul.mubr.msk.f32.vlgmr.msra.gmra.mrb[32].mxu0 %vm65_vm0, %v3393_v46 }
0x1c39   :  { %4346 = vmatpush3.bf16.msra.mxu0 %v4343_v19 }
0x1c3a   :  { %4348 = vmatprep.subr.bf16.mxu0 %v4347_v25 }
0x1c3d   :  { %4350 = vmatpush3.bf16.msra.mxu0 %v4347_v25 }
0x1c3e   :  { %4352 = vmatprep.subr.bf16.mxu0 %v4351_v28 }
0x1c41   :  { %4354 = vmatpush3.bf16.msra.mxu0 %v4351_v28 }
0x1c42   :  { %4356 = vmatprep.subr.bf16.mxu0 %v4355_v35 }
0x1c45   :  { %4358 = vmatpush3.bf16.msra.mxu0 %v4355_v35 }
0x1d0b   :  { %v4248_v10 = vpop.f32.mrb[32].mxu0 }
0x1d0c   :  { %v3485_v55 = vadd.f32 %v4248_v10, %v3873_v20  ;;  %v3479_v24 = vpop.f32.mrb[33].mxu0 }
0x1d0d   :  { %v3480_v52 = vadd.f32 %v3873_v20, %v3479_v24 }
0x1d0e   :  { %v3489_v56 = vadd.f32 %v3485_v55, %v4965_v45 }
0x1d0f   :  { %v3488_v59 = vadd.f32 %v3480_v52, %v4963_v42  ;;  %v3876_v42 = vld [vmem:[%s5264_s8 + $0x20] sm:$0xff] }
0x1d10   :  { %v3493_v23 = vsel %vm65_vm0, %v3489_v56, 0.0  ;;  %v4335_v2 = vpack.c.bf16 %v3877_v26, %v3876_v42 }
0x1d11   :  { %3494 = vadd.xlane.f32.xlu1 %v3493_v23  ;;  %v3490_v60 = vsel %vm65_vm0, %v3488_v59, 0.0 }
0x1d12   :  { %3491 = vadd.xlane.f32.xlu0 %v3490_v60  ;;  %4336 = vmatprep.subr.bf16.mxu1 %v4335_v2 }
0x1d13   :  { %4338 = vmatpush3.bf16.msra.mxu1 %v4335_v2 }
0x1d14   :  { %4340 = vmatprep.subr.bf16.mxu1 %v4339_v3 }
0x1d17   :  { %4342 = vmatpush3.bf16.msra.mxu1 %v4339_v3 }
0x1d9e   :  { %v3495_v61 = vpop.xlane.xlu1 %3494 }
0x1d9f   :  { %v3497_v62 = vmul.f32 0.03125, %v3495_v61  ;;  %v3492_v63 = vpop.xlane.xlu0 %3491 }
0x1da0   :  { %v3496_v43 = vmul.f32 0.03125, %v3492_v63 }
0x1da1   :  { %v3499_v41 = vsub.f32 %v3489_v56, %v3497_v62 }
0x1da2   :  { %v3498_v0 = vsub.f32 %v3488_v59, %v3496_v43 }
0x1da3   :  { %v3501_v44 = vmul.f32 %v3499_v41, %v3499_v41 }
0x1da4   :  { %v3500_v54 = vmul.f32 %v3498_v0, %v3498_v0 }
0x1da5   :  { %v3505_v45 = vsel %vm65_vm0, %v3501_v44, 0.0 }
0x1da6   :  { %v3502_v1 = vsel %vm65_vm0, %v3500_v54, 0.0 }
0x1da7   :  { %3503 = vadd.xlane.f32.xlu0 %v3502_v1  ;;  %v3892_v1 = vld [vmem:[%s5267_s11 + $0x1] ss:$0 sm:$0xff]  ;;  %s4539_s11 = smov [#allocation5]  }
0x1da8   :  { %s3785_s7 = sshll.u32 %s4539_s11, 4  ;;  %s3786_s7 = int_to_ptr.vmem [resolvable:$true] %s3785_s7 }
0x1da9   :  { %s4495_s16 = scalar_lea.vmem %s3786_s7, 256  ;;  %p4500_p9 = scmp.lt.s32.totalorder %s3786_s7, %s3786_s7 }
0x1daa   :  { %p4496_p8 = scmp.ne.s32.totalorder %s3786_s7, %s4495_s16  ;;  %p4501_p10 = scmp.lt.s32.totalorder %s4495_s16, %s4495_s16 }
0x1dab   :  { %3506 = vadd.xlane.f32.xlu0 %v3505_v45 }
0x1dac   :  { %p4502_p11 = por %p4501_p10, %p4500_p9 }
0x1dae   :  { %p4503_p12 = pnand %p4502_p11, %p4496_p8 }
0x1e34   :  { %v3504_v5 = vpop.xlane.xlu0 %3503 }
0x1e35   :  { %v3508_v7 = vmul.f32 0.03125, %v3504_v5 }
0x1e37   :  { %v3510_v48 = vadd.f32 1e-05, %v3508_v7 }
0x1e38   :  { %v3507_v47 = vpop.xlane.xlu0 %3506 }
0x1e39   :  { %4459 = vrsqrt.f32 %v3510_v48  ;;  %v3509_v8 = vmul.f32 0.03125, %v3507_v47 }
0x1e3b   :  { %v3511_v4 = vadd.f32 1e-05, %v3509_v8 }
0x1e3d   :  { %4461 = vrsqrt.f32 %v3511_v4 }
0x1e43   :  { %v4460_v11 = vpop.eup %4459 }
0x1e44   :  { %v3514_v12 = vmul.f32 %v4460_v11, %v3498_v0 }
0x1e46   :  { %v3520_v14 = vmul.f32 %v3519_v9, %v3514_v12 }
0x1e47   :  { %v4462_v50 = vpop.eup %4461 }
0x1e48   :  { %v3515_v49 = vmul.f32 %v4462_v50, %v3499_v41  ;;  %v3526_v15 = vadd.f32 %v3525_v13, %v3520_v14 }
0x1e4a   :  { %v3521_v16 = vmul.f32 %v3519_v9, %v3515_v49  ;;  %4257 = vmatprep.mubr.msk.f32.mxu1 %vm65_vm0, %v3526_v15 }
0x1e4c   :  { %v3527_v17 = vadd.f32 %v3525_v13, %v3521_v16 }
0x1e4e   :  { %4258 = vmatmul.mubr.msk.f32.vlgmr.msra.gmra.mrb[42].mxu1 %vm65_vm0, %v3527_v17 }
0x1f21   :  { %v4259_v38 = vpop.f32.mrb[42].mxu1 }
0x1f22   :  { %v3619_v39 = vadd.f32 %v4259_v38, %v3880_v37  ;;  %v3613_v22 = vpop.f32.mrb[43].mxu1 }
0x1f23   :  { %v3614_v51 = vadd.f32 %v3880_v37, %v3613_v22 }
0x1f24   :  { %v3625_v40 = vmul.f32 0.044715, %v3619_v39  ;;  %v3623_v41 = vmul.f32 0.5, %v3619_v39 }
0x1f25   :  { %v3624_v46 = vmul.f32 0.044715, %v3614_v51  ;;  %v3622_v63 = vmul.f32 0.5, %v3614_v51 }
0x1f26   :  { %v3627_v20 = vmul.f32 %v3625_v40, %v3619_v39 }
0x1f27   :  { %v3626_v10 = vmul.f32 %v3624_v46, %v3614_v51 }
0x1f28   :  { %v3629_v55 = vmul.f32 %v3627_v20, %v3619_v39 }
0x1f29   :  { %v3628_v24 = vmul.f32 %v3626_v10, %v3614_v51 }
0x1f2a   :  { %v3631_v52 = vadd.f32 %v3629_v55, %v3619_v39 }
0x1f2b   :  { %v3630_v56 = vadd.f32 %v3628_v24, %v3614_v51 }
0x1f2c   :  { %v3633_v59 = vmul.f32 0.7978845, %v3631_v52 }
0x1f2d   :  { %v3632_v23 = vmul.f32 0.7978845, %v3630_v56 }
0x1f2e   :  { %4463 = vtanh.f32 %v3633_v59 }
0x1f2f   :  { %4465 = vtanh.f32 %v3632_v23 }
0x1f38   :  { %v4464_v60 = vpop.eup %4463 }
0x1f39   :  { %v4466_v61 = vpop.eup %4465  ;;  %v3637_v62 = vadd.f32 1.0, %v4464_v60 }
0x1f3a   :  { %v3636_v43 = vadd.f32 1.0, %v4466_v61 }
0x1f3b   :  { %v3639_v54 = vmul.f32 %v3637_v62, %v3623_v41 }
0x1f3c   :  { %v3638_v0 = vmul.f32 %v3636_v43, %v3622_v63 }
0x1f3e   :  { %4276 = vmatprep.mubr.msk.f32.mxu0 %vm1824_vm5, %v3638_v0 }
0x1f3f   :  { %4277 = vmatmul.mubr.msk.f32.vlgmr.msra.gmra.mrb[34].mxu0 %vm1824_vm5, %v3639_v54 }
0x2012   :  { %v4278_v44 = vpop.f32.mrb[34].mxu0 }
0x2013   :  { %v3735_v45 = vadd.f32 %v4278_v44, %v3892_v1  ;;  %v3729_v42 = vpop.f32.mrb[35].mxu0 }
0x2014   :  { %v3730_v26 = vadd.f32 %v3892_v1, %v3729_v42 }
0x2015   :  { %v3739_v2 = vadd.f32 %v3735_v45, %v3527_v17 }
0x2016   :  { %v3738_v58 = vadd.f32 %v3730_v26, %v3526_v15 }
0x2017   :  { %v3743_v36 = vsel %vm65_vm0, %v3739_v2, 0.0 }
0x2018   :  { %3744 = vadd.xlane.f32.xlu1 %v3743_v36  ;;  %v3740_v3 = vsel %vm65_vm0, %v3738_v58, 0.0 }
0x2019   :  { %3741 = vadd.xlane.f32.xlu0 %v3740_v3 }
0x20a5   :  { %v3745_v5 = vpop.xlane.xlu1 %3744 }
0x20a6   :  { %v3747_v7 = vmul.f32 0.03125, %v3745_v5  ;;  %v3742_v48 = vpop.xlane.xlu0 %3741 }
0x20a7   :  { %v3746_v47 = vmul.f32 0.03125, %v3742_v48 }
0x20a8   :  { %v3749_v8 = vsub.f32 %v3739_v2, %v3747_v7 }
0x20a9   :  { %v3748_v4 = vsub.f32 %v3738_v58, %v3746_v47 }
0x20aa   :  { %v3751_v9 = vmul.f32 %v3749_v8, %v3749_v8 }
0x20ab   :  { %v3750_v11 = vmul.f32 %v3748_v4, %v3748_v4 }
0x20ac   :  { %v3755_v12 = vsel %vm65_vm0, %v3751_v9, 0.0 }
0x20ad   :  { %3756 = vadd.xlane.f32.xlu1 %v3755_v12  ;;  %v3752_v13 = vsel %vm65_vm0, %v3750_v11, 0.0 }
0x20ae   :  { %3753 = vadd.xlane.f32.xlu0 %v3752_v13 }
0x213a   :  { %v3757_v14 = vpop.xlane.xlu1 %3756 }
0x213b   :  { %v3759_v50 = vmul.f32 0.03125, %v3757_v14  ;;  %v3754_v49 = vpop.xlane.xlu0 %3753 }
0x213c   :  { %v3758_v15 = vmul.f32 0.03125, %v3754_v49 }
0x213d   :  { %v3761_v16 = vadd.f32 1e-05, %v3759_v50 }
0x213e   :  { %v3760_v17 = vadd.f32 1e-05, %v3758_v15 }
0x213f   :  { %4467 = vrsqrt.f32 %v3761_v16 }
0x2140   :  { %4469 = vrsqrt.f32 %v3760_v17 }
0x2149   :  { %v4468_v31 = vpop.eup %4467 }
0x214a   :  { %v4470_v19 = vpop.eup %4469  ;;  %v3765_v21 = vmul.f32 %v4468_v31, %v3749_v8 }
0x214b   :  { %v3764_v25 = vmul.f32 %v4470_v19, %v3748_v4 }
0x214c   :  { %v3771_v27 = vmul.f32 %v3769_v18, %v3765_v21 }
0x214d   :  { %v3770_v53 = vmul.f32 %v3769_v18, %v3764_v25 }
0x214e   :  { %v3777_v28 = vadd.f32 %v3775_v33, %v3771_v27 }
0x214f   :  { %v3776_v30 = vadd.f32 %v3775_v33, %v3770_v53 }
0x2150   :  { %3779 = vst.msk [vmem:[#allocation5 + $0x8] sm:$0xff] %vm65_vm0, %v3777_v28 }
0x2151   :  { %3778 = vst.msk [vmem:[#allocation5] sm:$0xff] %vm65_vm0, %v3776_v30 }
0x2152   :  { %4506 = shalt.err (!%p4503_p12)
}
0x2153   :  { %s4507_s24 = scalar_lea.hbm %s5269_s13, 256 }
0x2154   :  { %p4508_p13 = scmp.ne.s32.totalorder %s5269_s13, %s4507_s24  ;;  %p4511_p0 = scmp.lt.u32.totalorder %s4507_s24, %s5269_s13 }
0x2156   :  { %p4513_p1 = pnand %p4511_p0, %p4508_p13 }
0x2158   :  { %4516 = shalt.err (!%p4513_p1)
}
0x2159   :  { %s4540_s5 = smov 128  }
0x215a   :  { %3791 = dma.vmem_to_hbm [thread:$0]  %s3786_s7, 256, %s5269_s13, [#allocation4], %s4540_s5, %s4540_s5, %s5276_s2  }
0x215b   :  { %4519 = dma.done.wait [#allocation4], 256  }
0x215c   :  { %4520 = vsyncadd [#allocation4], 4294967040 }
0x215d   :  { %3795 = vsyncpa [#allocation3], 1 }
0x215e   :  { %3796 = vsyncpa [#allocation4], 1 }

</bundles_post_ra>
